<compile_context>
chip_gen: v7x
topology: tpu7x:2x2x1
jax: 0.10.0
libtpu: 0.0.40
codegen_flags: <defaults>
</compile_context>

<pallas_src>
import functools
import math

import jax
import jax.numpy as jnp
from jax.experimental import pallas as pl
from jax.experimental.pallas import tpu as pltpu


def mhca_kernel(x_ref, cond_ref, bias_ref,
                wq_ref, bq_ref, wk_ref, bk_ref, wv_ref, bv_ref, wp_ref, bp_ref,
                o_ref,
                q_scr, k_scr, v_scr, attn_scr,
                *, num_heads, head_dim):
    """Fused cross-attention forward for one (batch, query-block) grid cell.

    x_ref:    (1, tq, Cq)   query tokens block
    cond_ref: (1, M, Ckv)   conditioning tokens (full length)
    bias_ref: (1, 1, M)     additive key bias (0 attend / -1e30 masked), f32
    wq_ref:(Cq,D) bq_ref:(1,D)  wk_ref/wv_ref:(Ckv,D) bk_ref/bv_ref:(1,D)
    wp_ref:(D,Cq) bp_ref:(1,Cq)
    o_ref:    (1, tq, Cq)
    q_scr:(tq,D) k_scr/v_scr:(M,D) attn_scr:(tq,D) f32
    """
    x = x_ref[0]        # (tq, Cq)  native dtype -> MXU directly
    cond = cond_ref[0]  # (M, Ckv)

    # Projections: native-dtype operands, f32 accumulation on the MXU.
    # 1/sqrt(head_dim) is already folded into wq/bq by the wrapper.
    q = jnp.dot(x, wq_ref[...], preferred_element_type=jnp.float32) + bq_ref[...]
    k = jnp.dot(cond, wk_ref[...], preferred_element_type=jnp.float32) + bk_ref[...]
    v = jnp.dot(cond, wv_ref[...], preferred_element_type=jnp.float32) + bv_ref[...]

    # Park q/k/v in VMEM scratch: bounds vreg live ranges across the head loop
    # and keeps matmul operands in the (possibly bf16) input dtype.
    q_scr[...] = q.astype(q_scr.dtype)
    k_scr[...] = k.astype(k_scr.dtype)
    v_scr[...] = v.astype(v_scr.dtype)

    bias = bias_ref[0]  # (1, M) f32, hoisted out of the head loop

    dn = (((1,), (1,)), ((), ()))  # contract last dims; no batch dims.
    for h in range(num_heads):     # static unroll; num_heads is a small constant
        lo = h * head_dim
        qh = q_scr[:, lo:lo + head_dim]           # (tq, hd)
        kh = k_scr[:, lo:lo + head_dim]           # (M, hd)
        vh = v_scr[:, lo:lo + head_dim]           # (M, hd)

        # Q K^T without a materialized transpose (NT dot_general).
        s = jax.lax.dot_general(qh, kh, dn,
                                preferred_element_type=jnp.float32) + bias
        m = jnp.max(s, axis=-1, keepdims=True)
        p = jnp.exp(s - m)                        # unnormalized probs, f32
        l = jnp.sum(p, axis=-1, keepdims=True)    # (tq, 1)

        oh = jnp.dot(p.astype(vh.dtype), vh,
                     preferred_element_type=jnp.float32)       # (tq, hd)
        # Normalize after P@V ((tq,hd) muls instead of (tq,M)); recip on EUP.
        attn_scr[:, lo:lo + head_dim] = oh * pl.reciprocal(l, approx=True)

    # Single K=d_model output projection (replaces H small K=head_dim matmuls).
    out = jnp.dot(attn_scr[...].astype(wp_ref.dtype), wp_ref[...],
                  preferred_element_type=jnp.float32) + bp_ref[...]
    o_ref[0] = out.astype(o_ref.dtype)


def _pick_query_block(n, target=256):
    """Largest multiple-of-8 divisor of n that is <= target (else n itself)."""
    if n <= target:
        return n
    start = target - (target % 8)
    for b in range(start, 7, -8):
        if n % b == 0:
            return b
    return n


def _vmem_limit_bytes():
    # Raise v5e's 16 MiB scoped default; cap at half of physical VMEM so the
    # same setting stays safe on v7x (64 MiB physical).
    try:
        cap = int(pltpu.get_tpu_info().vmem_capacity_bytes)
    except Exception:
        cap = 64 * 1024 * 1024
    return min(64 * 1024 * 1024, cap // 2)


def mhca_forward(x, cond, mask, params, *, num_heads, use_masking):
    """x: (B, N, q_dim), cond: (B, M, kv_dim), mask: (B, M) or None."""
    B, N, Cq = x.shape
    _, M, Ckv = cond.shape
    d_model = params["wq"].shape[1]
    head_dim = d_model // num_heads
    scale = 1.0 / math.sqrt(head_dim)

    # Fold the attention scale into the query projection (exact: q only feeds QK^T).
    wq = (params["wq"] * scale).astype(params["wq"].dtype)
    bq = (params["bq"] * scale).astype(params["bq"].dtype)
    # Split the fused KV weights so k and v are produced lane-dense in-kernel
    # (no in-kernel column slice / relayout of an (M, 2D) result).
    wk = params["wkv"][:, :d_model]
    wv = params["wkv"][:, d_model:]
    bk = params["bkv"][:, :d_model]
    bv = params["bkv"][:, d_model:]
    wp, bp = params["wp"], params["bp"]

    # Additive key bias, computed once outside the kernel.  Large-finite negative
    # instead of -inf so a fully-masked row degrades to uniform attention rather
    # than NaN; otherwise bit-identical to masked_fill(-inf).
    if use_masking and mask is not None:
        bias = jnp.where(mask != 0.0, 0.0, -1e30).astype(jnp.float32)
    else:
        bias = jnp.zeros((B, M), jnp.float32)
    bias = bias.reshape(B, 1, M)

    tq = _pick_query_block(N)
    nq = N // tq
    grid = (B, nq)

    kernel = functools.partial(mhca_kernel, num_heads=num_heads, head_dim=head_dim)

    def run(single_buffer_weights):
        wkw = {"pipeline_mode": pl.Buffered(1)} if single_buffer_weights else {}

        def wspec(shape):
            # Weights/biases: same full block every grid step (stay resident);
            # single-buffered when supported — they never change across steps.
            return pl.BlockSpec(shape, lambda b, n: (0, 0), **wkw)

        return pl.pallas_call(
            kernel,
            out_shape=jax.ShapeDtypeStruct((B, N, Cq), x.dtype),
            grid=grid,
            in_specs=[
                pl.BlockSpec((1, tq, Cq), lambda b, n: (b, n, 0)),
                pl.BlockSpec((1, M, Ckv), lambda b, n: (b, 0, 0)),
                pl.BlockSpec((1, 1, M), lambda b, n: (b, 0, 0)),
                wspec((Cq, d_model)),
                wspec((1, d_model)),
                wspec((Ckv, d_model)),
                wspec((1, d_model)),
                wspec((Ckv, d_model)),
                wspec((1, d_model)),
                wspec((d_model, Cq)),
                wspec((1, Cq)),
            ],
            out_specs=pl.BlockSpec((1, tq, Cq), lambda b, n: (b, n, 0)),
            scratch_shapes=[
                pltpu.VMEM((tq, d_model), x.dtype),       # q
                pltpu.VMEM((M, d_model), cond.dtype),     # k
                pltpu.VMEM((M, d_model), cond.dtype),     # v
                pltpu.VMEM((tq, d_model), jnp.float32),   # concat head outputs
            ],
            compiler_params=pltpu.CompilerParams(
                dimension_semantics=("parallel", "parallel"),
                vmem_limit_bytes=_vmem_limit_bytes()),
        )(x, cond, bias, wq, bq, wk, bk, wv, bv, wp, bp)

    try:
        return run(True)
    except Exception:
        # pipeline_mode=pl.Buffered(1) unsupported in this JAX build: fall back
        # to default double-buffered weight blocks.
        return run(False)


class MultiHeadCrossAttentionVTPallas:
    """JAX/Pallas analogue of MultiHeadCrossAttention_VT (eval-mode forward)."""

    def __init__(self, q_dim, kv_dim, d_model, num_heads,
                 attn_drop=0.0, proj_drop=0.0, use_masking=False, seed=0):
        assert d_model % num_heads == 0, "d_model must be divisible by num_heads"
        self.q_dim = q_dim
        self.kv_dim = kv_dim
        self.d_model = d_model
        self.num_heads = num_heads
        self.head_dim = d_model // num_heads
        self.use_masking = use_masking
        # TODO(synk): attn_drop / proj_drop are train-time nn.Dropout; only the
        # eval-mode (identity) path is implemented here.
        self.attn_drop = attn_drop
        self.proj_drop = proj_drop

        key = jax.random.PRNGKey(seed)
        ks = jax.random.split(key, 6)

        def linear_init(kw, kb, fan_in, fan_out):
            bound = 1.0 / math.sqrt(fan_in)
            w = jax.random.uniform(kw, (fan_in, fan_out), jnp.float32, -bound, bound)
            b = jax.random.uniform(kb, (1, fan_out), jnp.float32, -bound, bound)
            return w, b

        wq, bq = linear_init(ks[0], ks[1], q_dim, d_model)
        wkv, bkv = linear_init(ks[2], ks[3], kv_dim, 2 * d_model)
        wp, bp = linear_init(ks[4], ks[5], d_model, q_dim)
        self.params = {"wq": wq, "bq": bq, "wkv": wkv, "bkv": bkv,
                       "wp": wp, "bp": bp}

    def __call__(self, x, cond, mask=None):
        return mhca_forward(x, cond, mask, self.params,
                            num_heads=self.num_heads,
                            use_masking=self.use_masking)


def _reference_forward(x, cond, mask, params, num_heads, use_masking):
    """Pure-JAX reference matching the PyTorch forward (eval mode)."""
    B, N, _ = x.shape
    d_model = params["wq"].shape[1]
    hd = d_model // num_heads
    q = jnp.einsum("bnc,cd->bnd", x, params["wq"]) + params["bq"][0]
    kv = jnp.einsum("bmc,cd->bmd", cond, params["wkv"]) + params["bkv"][0]
    k, v = kv[..., :d_model], kv[..., d_model:]
    qh = q.reshape(B, N, num_heads, hd).transpose(0, 2, 1, 3)
    kh = k.reshape(B, -1, num_heads, hd).transpose(0, 2, 1, 3)
    vh = v.reshape(B, -1, num_heads, hd).transpose(0, 2, 1, 3)
    s = jnp.einsum("bhnd,bhmd->bhnm", qh, kh) / math.sqrt(hd)
    if use_masking and mask is not None:
        s = s + jnp.where(mask[:, None, None, :] != 0, 0.0, -jnp.inf)
    p = jax.nn.softmax(s, axis=-1)
    o = jnp.einsum("bhnm,bhmd->bhnd", p, vh)
    o = o.transpose(0, 2, 1, 3).reshape(B, N, d_model)
    return jnp.einsum("bnd,dc->bnc", o, params["wp"]) + params["bp"][0]


if __name__ == "__main__":
    B, N, M = 2, 16, 8
    q_dim, kv_dim, d_model, num_heads = 32, 24, 32, 4

    key = jax.random.PRNGKey(0)
    kx, kc = jax.random.split(key)
    x = jax.random.normal(kx, (B, N, q_dim), jnp.float32)
    cond = jax.random.normal(kc, (B, M, kv_dim), jnp.float32)
    # Variable-length conditioning: second batch element has 3 masked keys.
    lengths = jnp.array([8, 5], jnp.int32)
    mask = (jnp.arange(M)[None, :] < lengths[:, None]).astype(jnp.float32)

    module = MultiHeadCrossAttentionVTPallas(
        q_dim, kv_dim, d_model, num_heads, use_masking=True, seed=0)

    # Masked forward.
    out = module(x, cond, mask)
    jax.block_until_ready(out)
    ref = _reference_forward(x, cond, mask, module.params, num_heads, True)
    assert out.shape == (B, N, q_dim)
    assert jnp.allclose(out, ref, atol=5e-3, rtol=5e-3), (
        float(jnp.max(jnp.abs(out - ref))))

    # Unmasked forward (mask=None path).
    out_nm = module(x, cond, None)
    jax.block_until_ready(out_nm)
    ref_nm = _reference_forward(x, cond, None, module.params, num_heads, True)
    assert jnp.allclose(out_nm, ref_nm, atol=5e-3, rtol=5e-3), (
        float(jnp.max(jnp.abs(out_nm - ref_nm))))

    print("KERNEL_OK")
</pallas_src>

<mosaic_0001>
module attributes {stable_mosaic.version = 11 : i64} {
  func.func @mhca_kernel(%arg0: i32, %arg1: i32, %arg2: memref<1x16x32xf32, #tpu.memory_space<vmem>>, %arg3: memref<1x8x24xf32, #tpu.memory_space<vmem>>, %arg4: memref<1x1x8xf32, #tpu.memory_space<vmem>>, %arg5: memref<32x32xf32, #tpu.memory_space<vmem>>, %arg6: memref<1x32xf32, #tpu.memory_space<vmem>>, %arg7: memref<24x32xf32, #tpu.memory_space<vmem>>, %arg8: memref<1x32xf32, #tpu.memory_space<vmem>>, %arg9: memref<24x32xf32, #tpu.memory_space<vmem>>, %arg10: memref<1x32xf32, #tpu.memory_space<vmem>>, %arg11: memref<32x32xf32, #tpu.memory_space<vmem>>, %arg12: memref<1x32xf32, #tpu.memory_space<vmem>>, %arg13: memref<1x16x32xf32, #tpu.memory_space<vmem>>, %arg14: memref<16x32xf32, #tpu.memory_space<vmem>>, %arg15: memref<8x32xf32, #tpu.memory_space<vmem>>, %arg16: memref<8x32xf32, #tpu.memory_space<vmem>>, %arg17: memref<16x32xf32, #tpu.memory_space<vmem>>) attributes {dimension_semantics = [#tpu.dimension_semantics<parallel>, #tpu.dimension_semantics<parallel>], iteration_bounds = array<i64: 2, 1>, scalar_prefetch = 0 : i64, scratch_operands = 4 : i64, tpu.core_type = #tpu.core_type<tc>, window_params = [{transform_indices = @transform_0, window_bounds = array<i64: 1, 16, 32>}, {transform_indices = @transform_1, window_bounds = array<i64: 1, 8, 24>}, {transform_indices = @transform_2, window_bounds = array<i64: 1, 1, 8>}, {pipeline_mode = #tpu.pipeline_mode<synchronous>, transform_indices = @transform_3, window_bounds = array<i64: 32, 32>}, {pipeline_mode = #tpu.pipeline_mode<synchronous>, transform_indices = @transform_4, window_bounds = array<i64: 1, 32>}, {pipeline_mode = #tpu.pipeline_mode<synchronous>, transform_indices = @transform_5, window_bounds = array<i64: 24, 32>}, {pipeline_mode = #tpu.pipeline_mode<synchronous>, transform_indices = @transform_6, window_bounds = array<i64: 1, 32>}, {pipeline_mode = #tpu.pipeline_mode<synchronous>, transform_indices = @transform_7, window_bounds = array<i64: 24, 32>}, {pipeline_mode = #tpu.pipeline_mode<synchronous>, transform_indices = @transform_8, window_bounds = array<i64: 1, 32>}, {pipeline_mode = #tpu.pipeline_mode<synchronous>, transform_indices = @transform_9, window_bounds = array<i64: 32, 32>}, {pipeline_mode = #tpu.pipeline_mode<synchronous>, transform_indices = @transform_10, window_bounds = array<i64: 1, 32>}, {transform_indices = @transform_11, window_bounds = array<i64: 1, 16, 32>}]} {
    %c0 = arith.constant 0 : index
    %c0_0 = arith.constant 0 : index
    %c0_1 = arith.constant 0 : index
    %0 = vector.load %arg2[%c0, %c0_0, %c0_1] : memref<1x16x32xf32, #tpu.memory_space<vmem>>, vector<1x16x32xf32>
    %1 = vector.shape_cast %0 : vector<1x16x32xf32> to vector<16x32xf32>
    %c0_2 = arith.constant 0 : index
    %c0_3 = arith.constant 0 : index
    %c0_4 = arith.constant 0 : index
    %2 = vector.load %arg3[%c0_2, %c0_3, %c0_4] : memref<1x8x24xf32, #tpu.memory_space<vmem>>, vector<1x8x24xf32>
    %3 = vector.shape_cast %2 : vector<1x8x24xf32> to vector<8x24xf32>
    %c0_5 = arith.constant 0 : index
    %c0_6 = arith.constant 0 : index
    %4 = vector.load %arg5[%c0_5, %c0_6] : memref<32x32xf32, #tpu.memory_space<vmem>>, vector<32x32xf32>
    %cst = arith.constant dense<0.000000e+00> : vector<16x32xf32>
    %5 = tpu.matmul %1, %4, %cst {dimension_numbers = #tpu.dot_dimension_numbers<[1], [0], [0], [1], [0, 0, 1, 1], [], []>} : vector<16x32xf32>, vector<32x32xf32>, vector<16x32xf32> -> vector<16x32xf32>
    %c0_7 = arith.constant 0 : index
    %c0_8 = arith.constant 0 : index
    %6 = vector.load %arg6[%c0_7, %c0_8] : memref<1x32xf32, #tpu.memory_space<vmem>>, vector<1x32xf32>
    %7 = vector.broadcast %6 : vector<1x32xf32> to vector<16x32xf32>
    %8 = arith.addf %5, %7 : vector<16x32xf32>
    %c0_9 = arith.constant 0 : index
    %c0_10 = arith.constant 0 : index
    %9 = vector.load %arg7[%c0_9, %c0_10] : memref<24x32xf32, #tpu.memory_space<vmem>>, vector<24x32xf32>
    %cst_11 = arith.constant dense<0.000000e+00> : vector<8x32xf32>
    %10 = tpu.matmul %3, %9, %cst_11 {dimension_numbers = #tpu.dot_dimension_numbers<[1], [0], [0], [1], [0, 0, 1, 1], [], []>} : vector<8x24xf32>, vector<24x32xf32>, vector<8x32xf32> -> vector<8x32xf32>
    %c0_12 = arith.constant 0 : index
    %c0_13 = arith.constant 0 : index
    %11 = vector.load %arg8[%c0_12, %c0_13] : memref<1x32xf32, #tpu.memory_space<vmem>>, vector<1x32xf32>
    %12 = vector.broadcast %11 : vector<1x32xf32> to vector<8x32xf32>
    %13 = arith.addf %10, %12 : vector<8x32xf32>
    %c0_14 = arith.constant 0 : index
    %c0_15 = arith.constant 0 : index
    %14 = vector.load %arg9[%c0_14, %c0_15] : memref<24x32xf32, #tpu.memory_space<vmem>>, vector<24x32xf32>
    %cst_16 = arith.constant dense<0.000000e+00> : vector<8x32xf32>
    %15 = tpu.matmul %3, %14, %cst_16 {dimension_numbers = #tpu.dot_dimension_numbers<[1], [0], [0], [1], [0, 0, 1, 1], [], []>} : vector<8x24xf32>, vector<24x32xf32>, vector<8x32xf32> -> vector<8x32xf32>
    %c0_17 = arith.constant 0 : index
    %c0_18 = arith.constant 0 : index
    %16 = vector.load %arg10[%c0_17, %c0_18] : memref<1x32xf32, #tpu.memory_space<vmem>>, vector<1x32xf32>
    %17 = vector.broadcast %16 : vector<1x32xf32> to vector<8x32xf32>
    %18 = arith.addf %15, %17 : vector<8x32xf32>
    %c0_19 = arith.constant 0 : index
    %c0_20 = arith.constant 0 : index
    %19 = vector.load %arg14[%c0_19, %c0_20] : memref<16x32xf32, #tpu.memory_space<vmem>>, vector<16x32xf32>
    tpu.vector_store %arg14[%c0_19, %c0_20], %8 {strides = array<i32>} : memref<16x32xf32, #tpu.memory_space<vmem>>, vector<16x32xf32>,
    %c0_21 = arith.constant 0 : index
    %c0_22 = arith.constant 0 : index
    %20 = vector.load %arg15[%c0_21, %c0_22] : memref<8x32xf32, #tpu.memory_space<vmem>>, vector<8x32xf32>
    tpu.vector_store %arg15[%c0_21, %c0_22], %13 {strides = array<i32>} : memref<8x32xf32, #tpu.memory_space<vmem>>, vector<8x32xf32>,
    %c0_23 = arith.constant 0 : index
    %c0_24 = arith.constant 0 : index
    %21 = vector.load %arg16[%c0_23, %c0_24] : memref<8x32xf32, #tpu.memory_space<vmem>>, vector<8x32xf32>
    tpu.vector_store %arg16[%c0_23, %c0_24], %18 {strides = array<i32>} : memref<8x32xf32, #tpu.memory_space<vmem>>, vector<8x32xf32>,
    %c0_25 = arith.constant 0 : index
    %c0_26 = arith.constant 0 : index
    %c0_27 = arith.constant 0 : index
    %22 = vector.load %arg4[%c0_25, %c0_26, %c0_27] : memref<1x1x8xf32, #tpu.memory_space<vmem>>, vector<1x1x8xf32>
    %23 = vector.shape_cast %22 : vector<1x1x8xf32> to vector<1x8xf32>
    %c0_28 = arith.constant 0 : index
    %c0_29 = arith.constant 0 : index
    %24 = vector.load %arg14[%c0_28, %c0_29] : memref<16x32xf32, #tpu.memory_space<vmem>>, vector<16x8xf32>
    %c0_30 = arith.constant 0 : index
    %c0_31 = arith.constant 0 : index
    %25 = vector.load %arg15[%c0_30, %c0_31] : memref<8x32xf32, #tpu.memory_space<vmem>>, vector<8x8xf32>
    %c0_32 = arith.constant 0 : index
    %c0_33 = arith.constant 0 : index
    %26 = vector.load %arg16[%c0_32, %c0_33] : memref<8x32xf32, #tpu.memory_space<vmem>>, vector<8x8xf32>
    %cst_34 = arith.constant dense<0.000000e+00> : vector<16x8xf32>
    %27 = tpu.matmul %24, %25, %cst_34 {dimension_numbers = #tpu.dot_dimension_numbers<[1], [1], [0], [0], [0, 0, 1, 0], [], []>} : vector<16x8xf32>, vector<8x8xf32>, vector<16x8xf32> -> vector<16x8xf32>
    %28 = vector.broadcast %23 : vector<1x8xf32> to vector<16x8xf32>
    %29 = arith.addf %27, %28 : vector<16x8xf32>
    %cst_35 = arith.constant dense<0xFF800000> : vector<16xf32>
    %30 = vector.multi_reduction <maximumf>, %29, %cst_35 [1] : vector<16x8xf32> to vector<16xf32>
    %31 = vector.shape_cast %30 : vector<16xf32> to vector<16x1xf32>
    %32 = vector.broadcast %31 : vector<16x1xf32> to vector<16x8xf32>
    %33 = arith.subf %29, %32 : vector<16x8xf32>
    %34 = math.exp %33 : vector<16x8xf32>
    %cst_36 = arith.constant dense<0.000000e+00> : vector<16xf32>
    %35 = vector.multi_reduction <add>, %34, %cst_36 [1] : vector<16x8xf32> to vector<16xf32>
    %36 = vector.shape_cast %35 : vector<16xf32> to vector<16x1xf32>
    %cst_37 = arith.constant dense<0.000000e+00> : vector<16x8xf32>
    %37 = tpu.matmul %34, %26, %cst_37 {dimension_numbers = #tpu.dot_dimension_numbers<[1], [0], [0], [1], [0, 0, 1, 1], [], []>} : vector<16x8xf32>, vector<8x8xf32>, vector<16x8xf32> -> vector<16x8xf32>
    %38 = tpu.reciprocal %36 {approx = true} : vector<16x1xf32> -> vector<16x1xf32>
    %39 = vector.broadcast %38 : vector<16x1xf32> to vector<16x8xf32>
    %40 = arith.mulf %37, %39 : vector<16x8xf32>
    %c0_38 = arith.constant 0 : index
    %c0_39 = arith.constant 0 : index
    %41 = vector.load %arg17[%c0_38, %c0_39] : memref<16x32xf32, #tpu.memory_space<vmem>>, vector<16x8xf32>
    tpu.vector_store %arg17[%c0_38, %c0_39], %40 {strides = array<i32>} : memref<16x32xf32, #tpu.memory_space<vmem>>, vector<16x8xf32>,
    %c0_40 = arith.constant 0 : index
    %c8 = arith.constant 8 : index
    %42 = vector.load %arg14[%c0_40, %c8] : memref<16x32xf32, #tpu.memory_space<vmem>>, vector<16x8xf32>
    %c0_41 = arith.constant 0 : index
    %c8_42 = arith.constant 8 : index
    %43 = vector.load %arg15[%c0_41, %c8_42] : memref<8x32xf32, #tpu.memory_space<vmem>>, vector<8x8xf32>
    %c0_43 = arith.constant 0 : index
    %c8_44 = arith.constant 8 : index
    %44 = vector.load %arg16[%c0_43, %c8_44] : memref<8x32xf32, #tpu.memory_space<vmem>>, vector<8x8xf32>
    %cst_45 = arith.constant dense<0.000000e+00> : vector<16x8xf32>
    %45 = tpu.matmul %42, %43, %cst_45 {dimension_numbers = #tpu.dot_dimension_numbers<[1], [1], [0], [0], [0, 0, 1, 0], [], []>} : vector<16x8xf32>, vector<8x8xf32>, vector<16x8xf32> -> vector<16x8xf32>
    %46 = vector.broadcast %23 : vector<1x8xf32> to vector<16x8xf32>
    %47 = arith.addf %45, %46 : vector<16x8xf32>
    %cst_46 = arith.constant dense<0xFF800000> : vector<16xf32>
    %48 = vector.multi_reduction <maximumf>, %47, %cst_46 [1] : vector<16x8xf32> to vector<16xf32>
    %49 = vector.shape_cast %48 : vector<16xf32> to vector<16x1xf32>
    %50 = vector.broadcast %49 : vector<16x1xf32> to vector<16x8xf32>
    %51 = arith.subf %47, %50 : vector<16x8xf32>
    %52 = math.exp %51 : vector<16x8xf32>
    %cst_47 = arith.constant dense<0.000000e+00> : vector<16xf32>
    %53 = vector.multi_reduction <add>, %52, %cst_47 [1] : vector<16x8xf32> to vector<16xf32>
    %54 = vector.shape_cast %53 : vector<16xf32> to vector<16x1xf32>
    %cst_48 = arith.constant dense<0.000000e+00> : vector<16x8xf32>
    %55 = tpu.matmul %52, %44, %cst_48 {dimension_numbers = #tpu.dot_dimension_numbers<[1], [0], [0], [1], [0, 0, 1, 1], [], []>} : vector<16x8xf32>, vector<8x8xf32>, vector<16x8xf32> -> vector<16x8xf32>
    %56 = tpu.reciprocal %54 {approx = true} : vector<16x1xf32> -> vector<16x1xf32>
    %57 = vector.broadcast %56 : vector<16x1xf32> to vector<16x8xf32>
    %58 = arith.mulf %55, %57 : vector<16x8xf32>
    %c0_49 = arith.constant 0 : index
    %c8_50 = arith.constant 8 : index
    %59 = vector.load %arg17[%c0_49, %c8_50] : memref<16x32xf32, #tpu.memory_space<vmem>>, vector<16x8xf32>
    tpu.vector_store %arg17[%c0_49, %c8_50], %58 {strides = array<i32>} : memref<16x32xf32, #tpu.memory_space<vmem>>, vector<16x8xf32>,
    %c0_51 = arith.constant 0 : index
    %c16 = arith.constant 16 : index
    %60 = vector.load %arg14[%c0_51, %c16] : memref<16x32xf32, #tpu.memory_space<vmem>>, vector<16x8xf32>
    %c0_52 = arith.constant 0 : index
    %c16_53 = arith.constant 16 : index
    %61 = vector.load %arg15[%c0_52, %c16_53] : memref<8x32xf32, #tpu.memory_space<vmem>>, vector<8x8xf32>
    %c0_54 = arith.constant 0 : index
    %c16_55 = arith.constant 16 : index
    %62 = vector.load %arg16[%c0_54, %c16_55] : memref<8x32xf32, #tpu.memory_space<vmem>>, vector<8x8xf32>
    %cst_56 = arith.constant dense<0.000000e+00> : vector<16x8xf32>
    %63 = tpu.matmul %60, %61, %cst_56 {dimension_numbers = #tpu.dot_dimension_numbers<[1], [1], [0], [0], [0, 0, 1, 0], [], []>} : vector<16x8xf32>, vector<8x8xf32>, vector<16x8xf32> -> vector<16x8xf32>
    %64 = vector.broadcast %23 : vector<1x8xf32> to vector<16x8xf32>
    %65 = arith.addf %63, %64 : vector<16x8xf32>
    %cst_57 = arith.constant dense<0xFF800000> : vector<16xf32>
    %66 = vector.multi_reduction <maximumf>, %65, %cst_57 [1] : vector<16x8xf32> to vector<16xf32>
    %67 = vector.shape_cast %66 : vector<16xf32> to vector<16x1xf32>
    %68 = vector.broadcast %67 : vector<16x1xf32> to vector<16x8xf32>
    %69 = arith.subf %65, %68 : vector<16x8xf32>
    %70 = math.exp %69 : vector<16x8xf32>
    %cst_58 = arith.constant dense<0.000000e+00> : vector<16xf32>
    %71 = vector.multi_reduction <add>, %70, %cst_58 [1] : vector<16x8xf32> to vector<16xf32>
    %72 = vector.shape_cast %71 : vector<16xf32> to vector<16x1xf32>
    %cst_59 = arith.constant dense<0.000000e+00> : vector<16x8xf32>
    %73 = tpu.matmul %70, %62, %cst_59 {dimension_numbers = #tpu.dot_dimension_numbers<[1], [0], [0], [1], [0, 0, 1, 1], [], []>} : vector<16x8xf32>, vector<8x8xf32>, vector<16x8xf32> -> vector<16x8xf32>
    %74 = tpu.reciprocal %72 {approx = true} : vector<16x1xf32> -> vector<16x1xf32>
    %75 = vector.broadcast %74 : vector<16x1xf32> to vector<16x8xf32>
    %76 = arith.mulf %73, %75 : vector<16x8xf32>
    %c0_60 = arith.constant 0 : index
    %c16_61 = arith.constant 16 : index
    %77 = vector.load %arg17[%c0_60, %c16_61] : memref<16x32xf32, #tpu.memory_space<vmem>>, vector<16x8xf32>
    tpu.vector_store %arg17[%c0_60, %c16_61], %76 {strides = array<i32>} : memref<16x32xf32, #tpu.memory_space<vmem>>, vector<16x8xf32>,
    %c0_62 = arith.constant 0 : index
    %c24 = arith.constant 24 : index
    %78 = vector.load %arg14[%c0_62, %c24] : memref<16x32xf32, #tpu.memory_space<vmem>>, vector<16x8xf32>
    %c0_63 = arith.constant 0 : index
    %c24_64 = arith.constant 24 : index
    %79 = vector.load %arg15[%c0_63, %c24_64] : memref<8x32xf32, #tpu.memory_space<vmem>>, vector<8x8xf32>
    %c0_65 = arith.constant 0 : index
    %c24_66 = arith.constant 24 : index
    %80 = vector.load %arg16[%c0_65, %c24_66] : memref<8x32xf32, #tpu.memory_space<vmem>>, vector<8x8xf32>
    %cst_67 = arith.constant dense<0.000000e+00> : vector<16x8xf32>
    %81 = tpu.matmul %78, %79, %cst_67 {dimension_numbers = #tpu.dot_dimension_numbers<[1], [1], [0], [0], [0, 0, 1, 0], [], []>} : vector<16x8xf32>, vector<8x8xf32>, vector<16x8xf32> -> vector<16x8xf32>
    %82 = vector.broadcast %23 : vector<1x8xf32> to vector<16x8xf32>
    %83 = arith.addf %81, %82 : vector<16x8xf32>
    %cst_68 = arith.constant dense<0xFF800000> : vector<16xf32>
    %84 = vector.multi_reduction <maximumf>, %83, %cst_68 [1] : vector<16x8xf32> to vector<16xf32>
    %85 = vector.shape_cast %84 : vector<16xf32> to vector<16x1xf32>
    %86 = vector.broadcast %85 : vector<16x1xf32> to vector<16x8xf32>
    %87 = arith.subf %83, %86 : vector<16x8xf32>
    %88 = math.exp %87 : vector<16x8xf32>
    %cst_69 = arith.constant dense<0.000000e+00> : vector<16xf32>
    %89 = vector.multi_reduction <add>, %88, %cst_69 [1] : vector<16x8xf32> to vector<16xf32>
    %90 = vector.shape_cast %89 : vector<16xf32> to vector<16x1xf32>
    %cst_70 = arith.constant dense<0.000000e+00> : vector<16x8xf32>
    %91 = tpu.matmul %88, %80, %cst_70 {dimension_numbers = #tpu.dot_dimension_numbers<[1], [0], [0], [1], [0, 0, 1, 1], [], []>} : vector<16x8xf32>, vector<8x8xf32>, vector<16x8xf32> -> vector<16x8xf32>
    %92 = tpu.reciprocal %90 {approx = true} : vector<16x1xf32> -> vector<16x1xf32>
    %93 = vector.broadcast %92 : vector<16x1xf32> to vector<16x8xf32>
    %94 = arith.mulf %91, %93 : vector<16x8xf32>
    %c0_71 = arith.constant 0 : index
    %c24_72 = arith.constant 24 : index
    %95 = vector.load %arg17[%c0_71, %c24_72] : memref<16x32xf32, #tpu.memory_space<vmem>>, vector<16x8xf32>
    tpu.vector_store %arg17[%c0_71, %c24_72], %94 {strides = array<i32>} : memref<16x32xf32, #tpu.memory_space<vmem>>, vector<16x8xf32>,
    %c0_73 = arith.constant 0 : index
    %c0_74 = arith.constant 0 : index
    %96 = vector.load %arg17[%c0_73, %c0_74] : memref<16x32xf32, #tpu.memory_space<vmem>>, vector<16x32xf32>
    %c0_75 = arith.constant 0 : index
    %c0_76 = arith.constant 0 : index
    %97 = vector.load %arg11[%c0_75, %c0_76] : memref<32x32xf32, #tpu.memory_space<vmem>>, vector<32x32xf32>
    %cst_77 = arith.constant dense<0.000000e+00> : vector<16x32xf32>
    %98 = tpu.matmul %96, %97, %cst_77 {dimension_numbers = #tpu.dot_dimension_numbers<[1], [0], [0], [1], [0, 0, 1, 1], [], []>} : vector<16x32xf32>, vector<32x32xf32>, vector<16x32xf32> -> vector<16x32xf32>
    %c0_78 = arith.constant 0 : index
    %c0_79 = arith.constant 0 : index
    %99 = vector.load %arg12[%c0_78, %c0_79] : memref<1x32xf32, #tpu.memory_space<vmem>>, vector<1x32xf32>
    %100 = vector.broadcast %99 : vector<1x32xf32> to vector<16x32xf32>
    %101 = arith.addf %98, %100 : vector<16x32xf32>
    %c0_80 = arith.constant 0 : index
    %c0_81 = arith.constant 0 : index
    %c0_82 = arith.constant 0 : index
    %102 = vector.load %arg13[%c0_80, %c0_81, %c0_82] : memref<1x16x32xf32, #tpu.memory_space<vmem>>, vector<1x16x32xf32>
    %103 = vector.shape_cast %102 : vector<1x16x32xf32> to vector<16x32xf32>
    %104 = vector.shape_cast %101 : vector<16x32xf32> to vector<1x16x32xf32>
    tpu.vector_store %arg13[%c0_80, %c0_81, %c0_82], %104 {strides = array<i32>} : memref<1x16x32xf32, #tpu.memory_space<vmem>>, vector<1x16x32xf32>,
    return
  }
  func.func @transform_0(%arg0: i32, %arg1: i32) -> (i32, i32, i32) {
    %c0_i32 = arith.constant 0 : i32
    %c0_i32_0 = arith.constant 0 : i32
    return %arg0, %arg1, %c0_i32 : i32, i32, i32
  }
  func.func @transform_1(%arg0: i32, %arg1: i32) -> (i32, i32, i32) {
    %c0_i32 = arith.constant 0 : i32
    %c0_i32_0 = arith.constant 0 : i32
    %c0_i32_1 = arith.constant 0 : i32
    return %arg0, %c0_i32, %c0_i32_0 : i32, i32, i32
  }
  func.func @transform_2(%arg0: i32, %arg1: i32) -> (i32, i32, i32) {
    %c0_i32 = arith.constant 0 : i32
    %c0_i32_0 = arith.constant 0 : i32
    %c0_i32_1 = arith.constant 0 : i32
    return %arg0, %c0_i32, %c0_i32_0 : i32, i32, i32
  }
  func.func @transform_3(%arg0: i32, %arg1: i32) -> (i32, i32) {
    %c0_i32 = arith.constant 0 : i32
    %c0_i32_0 = arith.constant 0 : i32
    %c0_i32_1 = arith.constant 0 : i32
    return %c0_i32, %c0_i32_0 : i32, i32
  }
  func.func @transform_4(%arg0: i32, %arg1: i32) -> (i32, i32) {
    %c0_i32 = arith.constant 0 : i32
    %c0_i32_0 = arith.constant 0 : i32
    %c0_i32_1 = arith.constant 0 : i32
    return %c0_i32, %c0_i32_0 : i32, i32
  }
  func.func @transform_5(%arg0: i32, %arg1: i32) -> (i32, i32) {
    %c0_i32 = arith.constant 0 : i32
    %c0_i32_0 = arith.constant 0 : i32
    %c0_i32_1 = arith.constant 0 : i32
    return %c0_i32, %c0_i32_0 : i32, i32
  }
  func.func @transform_6(%arg0: i32, %arg1: i32) -> (i32, i32) {
    %c0_i32 = arith.constant 0 : i32
    %c0_i32_0 = arith.constant 0 : i32
    %c0_i32_1 = arith.constant 0 : i32
    return %c0_i32, %c0_i32_0 : i32, i32
  }
  func.func @transform_7(%arg0: i32, %arg1: i32) -> (i32, i32) {
    %c0_i32 = arith.constant 0 : i32
    %c0_i32_0 = arith.constant 0 : i32
    %c0_i32_1 = arith.constant 0 : i32
    return %c0_i32, %c0_i32_0 : i32, i32
  }
  func.func @transform_8(%arg0: i32, %arg1: i32) -> (i32, i32) {
    %c0_i32 = arith.constant 0 : i32
    %c0_i32_0 = arith.constant 0 : i32
    %c0_i32_1 = arith.constant 0 : i32
    return %c0_i32, %c0_i32_0 : i32, i32
  }
  func.func @transform_9(%arg0: i32, %arg1: i32) -> (i32, i32) {
    %c0_i32 = arith.constant 0 : i32
    %c0_i32_0 = arith.constant 0 : i32
    %c0_i32_1 = arith.constant 0 : i32
    return %c0_i32, %c0_i32_0 : i32, i32
  }
  func.func @transform_10(%arg0: i32, %arg1: i32) -> (i32, i32) {
    %c0_i32 = arith.constant 0 : i32
    %c0_i32_0 = arith.constant 0 : i32
    %c0_i32_1 = arith.constant 0 : i32
    return %c0_i32, %c0_i32_0 : i32, i32
  }
  func.func @transform_11(%arg0: i32, %arg1: i32) -> (i32, i32, i32) {
    %c0_i32 = arith.constant 0 : i32
    %c0_i32_0 = arith.constant 0 : i32
    return %arg0, %arg1, %c0_i32 : i32, i32, i32
  }
}

module attributes {stable_mosaic.version = 11 : i64} {
  func.func @mhca_kernel(%arg0: i32, %arg1: i32, %arg2: memref<1x16x32xf32, #tpu.memory_space<vmem>>, %arg3: memref<1x8x24xf32, #tpu.memory_space<vmem>>, %arg4: memref<1x1x8xf32, #tpu.memory_space<vmem>>, %arg5: memref<32x32xf32, #tpu.memory_space<vmem>>, %arg6: memref<1x32xf32, #tpu.memory_space<vmem>>, %arg7: memref<24x32xf32, #tpu.memory_space<vmem>>, %arg8: memref<1x32xf32, #tpu.memory_space<vmem>>, %arg9: memref<24x32xf32, #tpu.memory_space<vmem>>, %arg10: memref<1x32xf32, #tpu.memory_space<vmem>>, %arg11: memref<32x32xf32, #tpu.memory_space<vmem>>, %arg12: memref<1x32xf32, #tpu.memory_space<vmem>>, %arg13: memref<1x16x32xf32, #tpu.memory_space<vmem>>, %arg14: memref<16x32xf32, #tpu.memory_space<vmem>>, %arg15: memref<8x32xf32, #tpu.memory_space<vmem>>, %arg16: memref<8x32xf32, #tpu.memory_space<vmem>>, %arg17: memref<16x32xf32, #tpu.memory_space<vmem>>) attributes {dimension_semantics = [#tpu.dimension_semantics<parallel>, #tpu.dimension_semantics<parallel>], iteration_bounds = array<i64: 2, 1>, scalar_prefetch = 0 : i64, scratch_operands = 4 : i64, tpu.core_type = #tpu.core_type<tc>, window_params = [{transform_indices = @transform_0, window_bounds = array<i64: 1, 16, 32>}, {transform_indices = @transform_1, window_bounds = array<i64: 1, 8, 24>}, {transform_indices = @transform_2, window_bounds = array<i64: 1, 1, 8>}, {pipeline_mode = #tpu.pipeline_mode<synchronous>, transform_indices = @transform_3, window_bounds = array<i64: 32, 32>}, {pipeline_mode = #tpu.pipeline_mode<synchronous>, transform_indices = @transform_4, window_bounds = array<i64: 1, 32>}, {pipeline_mode = #tpu.pipeline_mode<synchronous>, transform_indices = @transform_5, window_bounds = array<i64: 24, 32>}, {pipeline_mode = #tpu.pipeline_mode<synchronous>, transform_indices = @transform_6, window_bounds = array<i64: 1, 32>}, {pipeline_mode = #tpu.pipeline_mode<synchronous>, transform_indices = @transform_7, window_bounds = array<i64: 24, 32>}, {pipeline_mode = #tpu.pipeline_mode<synchronous>, transform_indices = @transform_8, window_bounds = array<i64: 1, 32>}, {pipeline_mode = #tpu.pipeline_mode<synchronous>, transform_indices = @transform_9, window_bounds = array<i64: 32, 32>}, {pipeline_mode = #tpu.pipeline_mode<synchronous>, transform_indices = @transform_10, window_bounds = array<i64: 1, 32>}, {transform_indices = @transform_11, window_bounds = array<i64: 1, 16, 32>}]} {
    %c0 = arith.constant 0 : index
    %c0_0 = arith.constant 0 : index
    %c0_1 = arith.constant 0 : index
    %0 = vector.load %arg2[%c0, %c0_0, %c0_1] : memref<1x16x32xf32, #tpu.memory_space<vmem>>, vector<1x16x32xf32>
    %1 = vector.shape_cast %0 : vector<1x16x32xf32> to vector<16x32xf32>
    %c0_2 = arith.constant 0 : index
    %c0_3 = arith.constant 0 : index
    %c0_4 = arith.constant 0 : index
    %2 = vector.load %arg3[%c0_2, %c0_3, %c0_4] : memref<1x8x24xf32, #tpu.memory_space<vmem>>, vector<1x8x24xf32>
    %3 = vector.shape_cast %2 : vector<1x8x24xf32> to vector<8x24xf32>
    %c0_5 = arith.constant 0 : index
    %c0_6 = arith.constant 0 : index
    %4 = vector.load %arg5[%c0_5, %c0_6] : memref<32x32xf32, #tpu.memory_space<vmem>>, vector<32x32xf32>
    %cst = arith.constant dense<0.000000e+00> : vector<16x32xf32>
    %5 = tpu.matmul %1, %4, %cst {dimension_numbers = #tpu.dot_dimension_numbers<[1], [0], [0], [1], [0, 0, 1, 1], [], []>} : vector<16x32xf32>, vector<32x32xf32>, vector<16x32xf32> -> vector<16x32xf32>
    %c0_7 = arith.constant 0 : index
    %c0_8 = arith.constant 0 : index
    %6 = vector.load %arg6[%c0_7, %c0_8] : memref<1x32xf32, #tpu.memory_space<vmem>>, vector<1x32xf32>
    %7 = vector.broadcast %6 : vector<1x32xf32> to vector<16x32xf32>
    %8 = arith.addf %5, %7 : vector<16x32xf32>
    %c0_9 = arith.constant 0 : index
    %c0_10 = arith.constant 0 : index
    %9 = vector.load %arg7[%c0_9, %c0_10] : memref<24x32xf32, #tpu.memory_space<vmem>>, vector<24x32xf32>
    %cst_11 = arith.constant dense<0.000000e+00> : vector<8x32xf32>
    %10 = tpu.matmul %3, %9, %cst_11 {dimension_numbers = #tpu.dot_dimension_numbers<[1], [0], [0], [1], [0, 0, 1, 1], [], []>} : vector<8x24xf32>, vector<24x32xf32>, vector<8x32xf32> -> vector<8x32xf32>
    %c0_12 = arith.constant 0 : index
    %c0_13 = arith.constant 0 : index
    %11 = vector.load %arg8[%c0_12, %c0_13] : memref<1x32xf32, #tpu.memory_space<vmem>>, vector<1x32xf32>
    %12 = vector.broadcast %11 : vector<1x32xf32> to vector<8x32xf32>
    %13 = arith.addf %10, %12 : vector<8x32xf32>
    %c0_14 = arith.constant 0 : index
    %c0_15 = arith.constant 0 : index
    %14 = vector.load %arg9[%c0_14, %c0_15] : memref<24x32xf32, #tpu.memory_space<vmem>>, vector<24x32xf32>
    %cst_16 = arith.constant dense<0.000000e+00> : vector<8x32xf32>
    %15 = tpu.matmul %3, %14, %cst_16 {dimension_numbers = #tpu.dot_dimension_numbers<[1], [0], [0], [1], [0, 0, 1, 1], [], []>} : vector<8x24xf32>, vector<24x32xf32>, vector<8x32xf32> -> vector<8x32xf32>
    %c0_17 = arith.constant 0 : index
    %c0_18 = arith.constant 0 : index
    %16 = vector.load %arg10[%c0_17, %c0_18] : memref<1x32xf32, #tpu.memory_space<vmem>>, vector<1x32xf32>
    %17 = vector.broadcast %16 : vector<1x32xf32> to vector<8x32xf32>
    %18 = arith.addf %15, %17 : vector<8x32xf32>
    %c0_19 = arith.constant 0 : index
    %c0_20 = arith.constant 0 : index
    %19 = vector.load %arg14[%c0_19, %c0_20] : memref<16x32xf32, #tpu.memory_space<vmem>>, vector<16x32xf32>
    tpu.vector_store %arg14[%c0_19, %c0_20], %8 {strides = array<i32>} : memref<16x32xf32, #tpu.memory_space<vmem>>, vector<16x32xf32>,
    %c0_21 = arith.constant 0 : index
    %c0_22 = arith.constant 0 : index
    %20 = vector.load %arg15[%c0_21, %c0_22] : memref<8x32xf32, #tpu.memory_space<vmem>>, vector<8x32xf32>
    tpu.vector_store %arg15[%c0_21, %c0_22], %13 {strides = array<i32>} : memref<8x32xf32, #tpu.memory_space<vmem>>, vector<8x32xf32>,
    %c0_23 = arith.constant 0 : index
    %c0_24 = arith.constant 0 : index
    %21 = vector.load %arg16[%c0_23, %c0_24] : memref<8x32xf32, #tpu.memory_space<vmem>>, vector<8x32xf32>
    tpu.vector_store %arg16[%c0_23, %c0_24], %18 {strides = array<i32>} : memref<8x32xf32, #tpu.memory_space<vmem>>, vector<8x32xf32>,
    %c0_25 = arith.constant 0 : index
    %c0_26 = arith.constant 0 : index
    %c0_27 = arith.constant 0 : index
    %22 = vector.load %arg4[%c0_25, %c0_26, %c0_27] : memref<1x1x8xf32, #tpu.memory_space<vmem>>, vector<1x1x8xf32>
    %23 = vector.shape_cast %22 : vector<1x1x8xf32> to vector<1x8xf32>
    %c0_28 = arith.constant 0 : index
    %c0_29 = arith.constant 0 : index
    %24 = vector.load %arg14[%c0_28, %c0_29] : memref<16x32xf32, #tpu.memory_space<vmem>>, vector<16x8xf32>
    %c0_30 = arith.constant 0 : index
    %c0_31 = arith.constant 0 : index
    %25 = vector.load %arg15[%c0_30, %c0_31] : memref<8x32xf32, #tpu.memory_space<vmem>>, vector<8x8xf32>
    %c0_32 = arith.constant 0 : index
    %c0_33 = arith.constant 0 : index
    %26 = vector.load %arg16[%c0_32, %c0_33] : memref<8x32xf32, #tpu.memory_space<vmem>>, vector<8x8xf32>
    %cst_34 = arith.constant dense<0.000000e+00> : vector<16x8xf32>
    %27 = tpu.matmul %24, %25, %cst_34 {dimension_numbers = #tpu.dot_dimension_numbers<[1], [1], [0], [0], [0, 0, 1, 0], [], []>} : vector<16x8xf32>, vector<8x8xf32>, vector<16x8xf32> -> vector<16x8xf32>
    %28 = vector.broadcast %23 : vector<1x8xf32> to vector<16x8xf32>
    %29 = arith.addf %27, %28 : vector<16x8xf32>
    %cst_35 = arith.constant dense<0xFF800000> : vector<16xf32>
    %30 = vector.multi_reduction <maximumf>, %29, %cst_35 [1] : vector<16x8xf32> to vector<16xf32>
    %31 = vector.shape_cast %30 : vector<16xf32> to vector<16x1xf32>
    %32 = vector.broadcast %31 : vector<16x1xf32> to vector<16x8xf32>
    %33 = arith.subf %29, %32 : vector<16x8xf32>
    %34 = math.exp %33 : vector<16x8xf32>
    %cst_36 = arith.constant dense<0.000000e+00> : vector<16xf32>
    %35 = vector.multi_reduction <add>, %34, %cst_36 [1] : vector<16x8xf32> to vector<16xf32>
    %36 = vector.shape_cast %35 : vector<16xf32> to vector<16x1xf32>
    %cst_37 = arith.constant dense<0.000000e+00> : vector<16x8xf32>
    %37 = tpu.matmul %34, %26, %cst_37 {dimension_numbers = #tpu.dot_dimension_numbers<[1], [0], [0], [1], [0, 0, 1, 1], [], []>} : vector<16x8xf32>, vector<8x8xf32>, vector<16x8xf32> -> vector<16x8xf32>
    %38 = tpu.reciprocal %36 {approx = true} : vector<16x1xf32> -> vector<16x1xf32>
    %39 = vector.broadcast %38 : vector<16x1xf32> to vector<16x8xf32>
    %40 = arith.mulf %37, %39 : vector<16x8xf32>
    %c0_38 = arith.constant 0 : index
    %c0_39 = arith.constant 0 : index
    %41 = vector.load %arg17[%c0_38, %c0_39] : memref<16x32xf32, #tpu.memory_space<vmem>>, vector<16x8xf32>
    tpu.vector_store %arg17[%c0_38, %c0_39], %40 {strides = array<i32>} : memref<16x32xf32, #tpu.memory_space<vmem>>, vector<16x8xf32>,
    %c0_40 = arith.constant 0 : index
    %c8 = arith.constant 8 : index
    %42 = vector.load %arg14[%c0_40, %c8] : memref<16x32xf32, #tpu.memory_space<vmem>>, vector<16x8xf32>
    %c0_41 = arith.constant 0 : index
    %c8_42 = arith.constant 8 : index
    %43 = vector.load %arg15[%c0_41, %c8_42] : memref<8x32xf32, #tpu.memory_space<vmem>>, vector<8x8xf32>
    %c0_43 = arith.constant 0 : index
    %c8_44 = arith.constant 8 : index
    %44 = vector.load %arg16[%c0_43, %c8_44] : memref<8x32xf32, #tpu.memory_space<vmem>>, vector<8x8xf32>
    %cst_45 = arith.constant dense<0.000000e+00> : vector<16x8xf32>
    %45 = tpu.matmul %42, %43, %cst_45 {dimension_numbers = #tpu.dot_dimension_numbers<[1], [1], [0], [0], [0, 0, 1, 0], [], []>} : vector<16x8xf32>, vector<8x8xf32>, vector<16x8xf32> -> vector<16x8xf32>
    %46 = vector.broadcast %23 : vector<1x8xf32> to vector<16x8xf32>
    %47 = arith.addf %45, %46 : vector<16x8xf32>
    %cst_46 = arith.constant dense<0xFF800000> : vector<16xf32>
    %48 = vector.multi_reduction <maximumf>, %47, %cst_46 [1] : vector<16x8xf32> to vector<16xf32>
    %49 = vector.shape_cast %48 : vector<16xf32> to vector<16x1xf32>
    %50 = vector.broadcast %49 : vector<16x1xf32> to vector<16x8xf32>
    %51 = arith.subf %47, %50 : vector<16x8xf32>
    %52 = math.exp %51 : vector<16x8xf32>
    %cst_47 = arith.constant dense<0.000000e+00> : vector<16xf32>
    %53 = vector.multi_reduction <add>, %52, %cst_47 [1] : vector<16x8xf32> to vector<16xf32>
    %54 = vector.shape_cast %53 : vector<16xf32> to vector<16x1xf32>
    %cst_48 = arith.constant dense<0.000000e+00> : vector<16x8xf32>
    %55 = tpu.matmul %52, %44, %cst_48 {dimension_numbers = #tpu.dot_dimension_numbers<[1], [0], [0], [1], [0, 0, 1, 1], [], []>} : vector<16x8xf32>, vector<8x8xf32>, vector<16x8xf32> -> vector<16x8xf32>
    %56 = tpu.reciprocal %54 {approx = true} : vector<16x1xf32> -> vector<16x1xf32>
    %57 = vector.broadcast %56 : vector<16x1xf32> to vector<16x8xf32>
    %58 = arith.mulf %55, %57 : vector<16x8xf32>
    %c0_49 = arith.constant 0 : index
    %c8_50 = arith.constant 8 : index
    %59 = vector.load %arg17[%c0_49, %c8_50] : memref<16x32xf32, #tpu.memory_space<vmem>>, vector<16x8xf32>
    tpu.vector_store %arg17[%c0_49, %c8_50], %58 {strides = array<i32>} : memref<16x32xf32, #tpu.memory_space<vmem>>, vector<16x8xf32>,
    %c0_51 = arith.constant 0 : index
    %c16 = arith.constant 16 : index
    %60 = vector.load %arg14[%c0_51, %c16] : memref<16x32xf32, #tpu.memory_space<vmem>>, vector<16x8xf32>
    %c0_52 = arith.constant 0 : index
    %c16_53 = arith.constant 16 : index
    %61 = vector.load %arg15[%c0_52, %c16_53] : memref<8x32xf32, #tpu.memory_space<vmem>>, vector<8x8xf32>
    %c0_54 = arith.constant 0 : index
    %c16_55 = arith.constant 16 : index
    %62 = vector.load %arg16[%c0_54, %c16_55] : memref<8x32xf32, #tpu.memory_space<vmem>>, vector<8x8xf32>
    %cst_56 = arith.constant dense<0.000000e+00> : vector<16x8xf32>
    %63 = tpu.matmul %60, %61, %cst_56 {dimension_numbers = #tpu.dot_dimension_numbers<[1], [1], [0], [0], [0, 0, 1, 0], [], []>} : vector<16x8xf32>, vector<8x8xf32>, vector<16x8xf32> -> vector<16x8xf32>
    %64 = vector.broadcast %23 : vector<1x8xf32> to vector<16x8xf32>
    %65 = arith.addf %63, %64 : vector<16x8xf32>
    %cst_57 = arith.constant dense<0xFF800000> : vector<16xf32>
    %66 = vector.multi_reduction <maximumf>, %65, %cst_57 [1] : vector<16x8xf32> to vector<16xf32>
    %67 = vector.shape_cast %66 : vector<16xf32> to vector<16x1xf32>
    %68 = vector.broadcast %67 : vector<16x1xf32> to vector<16x8xf32>
    %69 = arith.subf %65, %68 : vector<16x8xf32>
    %70 = math.exp %69 : vector<16x8xf32>
    %cst_58 = arith.constant dense<0.000000e+00> : vector<16xf32>
    %71 = vector.multi_reduction <add>, %70, %cst_58 [1] : vector<16x8xf32> to vector<16xf32>
    %72 = vector.shape_cast %71 : vector<16xf32> to vector<16x1xf32>
    %cst_59 = arith.constant dense<0.000000e+00> : vector<16x8xf32>
    %73 = tpu.matmul %70, %62, %cst_59 {dimension_numbers = #tpu.dot_dimension_numbers<[1], [0], [0], [1], [0, 0, 1, 1], [], []>} : vector<16x8xf32>, vector<8x8xf32>, vector<16x8xf32> -> vector<16x8xf32>
    %74 = tpu.reciprocal %72 {approx = true} : vector<16x1xf32> -> vector<16x1xf32>
    %75 = vector.broadcast %74 : vector<16x1xf32> to vector<16x8xf32>
    %76 = arith.mulf %73, %75 : vector<16x8xf32>
    %c0_60 = arith.constant 0 : index
    %c16_61 = arith.constant 16 : index
    %77 = vector.load %arg17[%c0_60, %c16_61] : memref<16x32xf32, #tpu.memory_space<vmem>>, vector<16x8xf32>
    tpu.vector_store %arg17[%c0_60, %c16_61], %76 {strides = array<i32>} : memref<16x32xf32, #tpu.memory_space<vmem>>, vector<16x8xf32>,
    %c0_62 = arith.constant 0 : index
    %c24 = arith.constant 24 : index
    %78 = vector.load %arg14[%c0_62, %c24] : memref<16x32xf32, #tpu.memory_space<vmem>>, vector<16x8xf32>
    %c0_63 = arith.constant 0 : index
    %c24_64 = arith.constant 24 : index
    %79 = vector.load %arg15[%c0_63, %c24_64] : memref<8x32xf32, #tpu.memory_space<vmem>>, vector<8x8xf32>
    %c0_65 = arith.constant 0 : index
    %c24_66 = arith.constant 24 : index
    %80 = vector.load %arg16[%c0_65, %c24_66] : memref<8x32xf32, #tpu.memory_space<vmem>>, vector<8x8xf32>
    %cst_67 = arith.constant dense<0.000000e+00> : vector<16x8xf32>
    %81 = tpu.matmul %78, %79, %cst_67 {dimension_numbers = #tpu.dot_dimension_numbers<[1], [1], [0], [0], [0, 0, 1, 0], [], []>} : vector<16x8xf32>, vector<8x8xf32>, vector<16x8xf32> -> vector<16x8xf32>
    %82 = vector.broadcast %23 : vector<1x8xf32> to vector<16x8xf32>
    %83 = arith.addf %81, %82 : vector<16x8xf32>
    %cst_68 = arith.constant dense<0xFF800000> : vector<16xf32>
    %84 = vector.multi_reduction <maximumf>, %83, %cst_68 [1] : vector<16x8xf32> to vector<16xf32>
    %85 = vector.shape_cast %84 : vector<16xf32> to vector<16x1xf32>
    %86 = vector.broadcast %85 : vector<16x1xf32> to vector<16x8xf32>
    %87 = arith.subf %83, %86 : vector<16x8xf32>
    %88 = math.exp %87 : vector<16x8xf32>
    %cst_69 = arith.constant dense<0.000000e+00> : vector<16xf32>
    %89 = vector.multi_reduction <add>, %88, %cst_69 [1] : vector<16x8xf32> to vector<16xf32>
    %90 = vector.shape_cast %89 : vector<16xf32> to vector<16x1xf32>
    %cst_70 = arith.constant dense<0.000000e+00> : vector<16x8xf32>
    %91 = tpu.matmul %88, %80, %cst_70 {dimension_numbers = #tpu.dot_dimension_numbers<[1], [0], [0], [1], [0, 0, 1, 1], [], []>} : vector<16x8xf32>, vector<8x8xf32>, vector<16x8xf32> -> vector<16x8xf32>
    %92 = tpu.reciprocal %90 {approx = true} : vector<16x1xf32> -> vector<16x1xf32>
    %93 = vector.broadcast %92 : vector<16x1xf32> to vector<16x8xf32>
    %94 = arith.mulf %91, %93 : vector<16x8xf32>
    %c0_71 = arith.constant 0 : index
    %c24_72 = arith.constant 24 : index
    %95 = vector.load %arg17[%c0_71, %c24_72] : memref<16x32xf32, #tpu.memory_space<vmem>>, vector<16x8xf32>
    tpu.vector_store %arg17[%c0_71, %c24_72], %94 {strides = array<i32>} : memref<16x32xf32, #tpu.memory_space<vmem>>, vector<16x8xf32>,
    %c0_73 = arith.constant 0 : index
    %c0_74 = arith.constant 0 : index
    %96 = vector.load %arg17[%c0_73, %c0_74] : memref<16x32xf32, #tpu.memory_space<vmem>>, vector<16x32xf32>
    %c0_75 = arith.constant 0 : index
    %c0_76 = arith.constant 0 : index
    %97 = vector.load %arg11[%c0_75, %c0_76] : memref<32x32xf32, #tpu.memory_space<vmem>>, vector<32x32xf32>
    %cst_77 = arith.constant dense<0.000000e+00> : vector<16x32xf32>
    %98 = tpu.matmul %96, %97, %cst_77 {dimension_numbers = #tpu.dot_dimension_numbers<[1], [0], [0], [1], [0, 0, 1, 1], [], []>} : vector<16x32xf32>, vector<32x32xf32>, vector<16x32xf32> -> vector<16x32xf32>
    %c0_78 = arith.constant 0 : index
    %c0_79 = arith.constant 0 : index
    %99 = vector.load %arg12[%c0_78, %c0_79] : memref<1x32xf32, #tpu.memory_space<vmem>>, vector<1x32xf32>
    %100 = vector.broadcast %99 : vector<1x32xf32> to vector<16x32xf32>
    %101 = arith.addf %98, %100 : vector<16x32xf32>
    %c0_80 = arith.constant 0 : index
    %c0_81 = arith.constant 0 : index
    %c0_82 = arith.constant 0 : index
    %102 = vector.load %arg13[%c0_80, %c0_81, %c0_82] : memref<1x16x32xf32, #tpu.memory_space<vmem>>, vector<1x16x32xf32>
    %103 = vector.shape_cast %102 : vector<1x16x32xf32> to vector<16x32xf32>
    %104 = vector.shape_cast %101 : vector<16x32xf32> to vector<1x16x32xf32>
    tpu.vector_store %arg13[%c0_80, %c0_81, %c0_82], %104 {strides = array<i32>} : memref<1x16x32xf32, #tpu.memory_space<vmem>>, vector<1x16x32xf32>,
    return
  }
  func.func @transform_0(%arg0: i32, %arg1: i32) -> (i32, i32, i32) {
    %c0_i32 = arith.constant 0 : i32
    %c0_i32_0 = arith.constant 0 : i32
    return %arg0, %arg1, %c0_i32 : i32, i32, i32
  }
  func.func @transform_1(%arg0: i32, %arg1: i32) -> (i32, i32, i32) {
    %c0_i32 = arith.constant 0 : i32
    %c0_i32_0 = arith.constant 0 : i32
    %c0_i32_1 = arith.constant 0 : i32
    return %arg0, %c0_i32, %c0_i32_0 : i32, i32, i32
  }
  func.func @transform_2(%arg0: i32, %arg1: i32) -> (i32, i32, i32) {
    %c0_i32 = arith.constant 0 : i32
    %c0_i32_0 = arith.constant 0 : i32
    %c0_i32_1 = arith.constant 0 : i32
    return %arg0, %c0_i32, %c0_i32_0 : i32, i32, i32
  }
  func.func @transform_3(%arg0: i32, %arg1: i32) -> (i32, i32) {
    %c0_i32 = arith.constant 0 : i32
    %c0_i32_0 = arith.constant 0 : i32
    %c0_i32_1 = arith.constant 0 : i32
    return %c0_i32, %c0_i32_0 : i32, i32
  }
  func.func @transform_4(%arg0: i32, %arg1: i32) -> (i32, i32) {
    %c0_i32 = arith.constant 0 : i32
    %c0_i32_0 = arith.constant 0 : i32
    %c0_i32_1 = arith.constant 0 : i32
    return %c0_i32, %c0_i32_0 : i32, i32
  }
  func.func @transform_5(%arg0: i32, %arg1: i32) -> (i32, i32) {
    %c0_i32 = arith.constant 0 : i32
    %c0_i32_0 = arith.constant 0 : i32
    %c0_i32_1 = arith.constant 0 : i32
    return %c0_i32, %c0_i32_0 : i32, i32
  }
  func.func @transform_6(%arg0: i32, %arg1: i32) -> (i32, i32) {
    %c0_i32 = arith.constant 0 : i32
    %c0_i32_0 = arith.constant 0 : i32
    %c0_i32_1 = arith.constant 0 : i32
    return %c0_i32, %c0_i32_0 : i32, i32
  }
  func.func @transform_7(%arg0: i32, %arg1: i32) -> (i32, i32) {
    %c0_i32 = arith.constant 0 : i32
    %c0_i32_0 = arith.constant 0 : i32
    %c0_i32_1 = arith.constant 0 : i32
    return %c0_i32, %c0_i32_0 : i32, i32
  }
  func.func @transform_8(%arg0: i32, %arg1: i32) -> (i32, i32) {
    %c0_i32 = arith.constant 0 : i32
    %c0_i32_0 = arith.constant 0 : i32
    %c0_i32_1 = arith.constant 0 : i32
    return %c0_i32, %c0_i32_0 : i32, i32
  }
  func.func @transform_9(%arg0: i32, %arg1: i32) -> (i32, i32) {
    %c0_i32 = arith.constant 0 : i32
    %c0_i32_0 = arith.constant 0 : i32
    %c0_i32_1 = arith.constant 0 : i32
    return %c0_i32, %c0_i32_0 : i32, i32
  }
  func.func @transform_10(%arg0: i32, %arg1: i32) -> (i32, i32) {
    %c0_i32 = arith.constant 0 : i32
    %c0_i32_0 = arith.constant 0 : i32
    %c0_i32_1 = arith.constant 0 : i32
    return %c0_i32, %c0_i32_0 : i32, i32
  }
  func.func @transform_11(%arg0: i32, %arg1: i32) -> (i32, i32, i32) {
    %c0_i32 = arith.constant 0 : i32
    %c0_i32_0 = arith.constant 0 : i32
    return %arg0, %arg1, %c0_i32 : i32, i32, i32
  }
}

</mosaic_0001>

<bundles_post_ra>
// kernel: tpu_custom_call.1
= control target key start
LH: loop header
LB: loop body
LE: loop exit
PB: predicated region body
PF: predicated region fallthrough
CT: control target
= control target key end

     0   :  { %s3231_s0 = inlined_call_operand.hbm [shape: f32[2,16,32], index: 0, kind: input, shape index: {}]   ;;  %s3232_s1 = inlined_call_operand.hbm [shape: f32[2,8,24], index: 1, kind: input, shape index: {}]   ;;  %s3233_s2 = inlined_call_operand.vmem [shape: f32[2,1,8], index: 2, kind: input, shape index: {}]   ;;  %s3234_s3 = inlined_call_operand.hbm [shape: f32[32,32], index: 3, kind: input, shape index: {}]   ;;  %s3235_s4 = inlined_call_operand.hbm [shape: f32[1,32], index: 4, kind: input, shape index: {}]   ;;  %s3236_s5 = inlined_call_operand.hbm [shape: f32[24,32], index: 5, kind: input, shape index: {}]   ;;  %s3237_s6 = inlined_call_operand.hbm [shape: f32[1,32], index: 6, kind: input, shape index: {}]   ;;  %s3238_s7 = inlined_call_operand.hbm [shape: f32[24,32], index: 7, kind: input, shape index: {}]   ;;  %s3239_s8 = inlined_call_operand.hbm [shape: f32[1,32], index: 8, kind: input, shape index: {}]   ;;  %s3240_s9 = inlined_call_operand.vmem [shape: f32[32,32], index: 9, kind: input, shape index: {}]   ;;  %s3241_s10 = inlined_call_operand.vmem [shape: f32[1,32], index: 10, kind: input, shape index: {}]   ;;  %s3242_s11 = inlined_call_operand.hbm [shape: f32[2,16,32], index: 11, kind: output, shape index: {}]  }
   0x1   :  { %3253 = sst [smem:[#allocation29_spill]] %s3231_s0 }
   0x2   :  { %3254 = sst [smem:[#allocation30_spill]] %s3233_s2 }
   0x3   :  { %3255 = sst [smem:[#allocation31_spill]] %s3234_s3 }
   0x4   :  { %3256 = sst [smem:[#allocation32_spill]] %s3235_s4 }
   0x5   :  { %3257 = sst [smem:[#allocation33_spill]] %s3236_s5 }
   0x6   :  { %3258 = sst [smem:[#allocation34_spill]] %s3237_s6 }
   0x7   :  { %3259 = sst [smem:[#allocation35_spill]] %s3238_s7 }
   0x8   :  { %3260 = sst [smem:[#allocation36_spill]] %s3240_s9 }
   0x9   :  { %3261 = sst [smem:[#allocation37_spill]] %s3241_s10 }
   0xa   :  { %3262 = sst [smem:[#allocation38_spill]] %s3242_s11 }
   0xb   :  { %16 = vsyncpa [#allocation7], 0 }
   0xc   :  { %18 = vsyncpa [#allocation7 + $0x1], 0 }
   0xd   :  { %19 = vsyncpa [#allocation10], 0 }
   0xe   :  { %21 = vsyncpa [#allocation10 + $0x1], 0 }
   0xf   :  { %22 = vsyncpa [#allocation13], 0 }
  0x10   :  { %23 = vsyncpa [#allocation16], 0 }
  0x11   :  { %24 = vsyncpa [#allocation19], 0 }
  0x12   :  { %25 = vsyncpa [#allocation8], 0 }
  0x13   :  { %27 = vsyncpa [#allocation8 + $0x1], 0  ;;  %s2740_s17 = smov 0   ;;  %s2742_s18 = smov 0  }
  0x14   :  { %s2744_s19 = smov 0   ;;  %s2746_s20 = smov 0  }
  0x15   :  { %s2748_s21 = smov 0   ;;  %s2750_s22 = smov 0  }
  0x16 LB: > { %3263 = sst [smem:[#allocation28_spill]] %s2649_s20  ;;  %s2771_s23 = sadd.s32 4294967295, %s2657_s22   ;;  %s2657_s22 = sphi %s2750_s22, %s33_s22   ;;  %s2653_s21 = sphi %s2748_s21, %s3305_s21   ;;  %s2649_s20 = sphi %s2746_s20, %s3304_s20   ;;  %s2645_s19 = sphi %s2744_s19, %s3303_s19   ;;  %s2641_s18 = sphi %s2742_s18, %s3302_s18   ;;  %s2637_s17 = sphi %s2740_s17, %s3301_s17  }
  0x17   : > { %p1948_p0 = scmp.ge.s32.totalorder %s2657_s22, 1  ;;  %p3246_p1 = scmp.eq.s32.totalorder %s2771_s23, 0 }
  0x18   : > { %p326_p2 = scmp.lt.s32.totalorder %s2657_s22, 3  ;;  %s2659_s25 = smov [#allocation11]  }
  0x19   : > { %s338_s26 = sshll.u32 %s2659_s25, 4  ;;  %s2660_s28 = smov [#allocation12]   ;;  %s2780_s26 = int_to_ptr.vmem [resolvable:$true] %s338_s26 }
  0x1a   : > { %p2776_p3 = pnand %p1948_p0, %p326_p2  ;;  %s352_s29 = sshll.u32 %s2660_s28, 4  ;;  %s2791_s29 = int_to_ptr.vmem [resolvable:$true] %s352_s29 }
  0x1b   : > { %s2661_s30 = smov [#allocation15]   ;;  %s3266_s3 = sld [smem:[#allocation31_spill]] }
  0x1c   : > { %s3264_s24 = scalar_select %p2776_p3, 1, 0 }
  0x1d   : > { %p2185_p4 = pneg %p2776_p3  ;;  %s2793_s12 = sshll.u32 %s2661_s30, 4  ;;  %s377_s12 = int_to_ptr.vmem [resolvable:$true] %s2793_s12 }
  0x1f   : > { %p2787_p6 = pnand %p2185_p4, %p3246_p1 }
  0x21   : > { %s2327_s15 = scalar_lea.hbm %s3266_s3, 512  ;;  %p2803_p8 = pneg %p2787_p6 }
  0x22   : > { %p2328_p7 = scmp.ne.s32.totalorder %s3266_s3, %s2327_s15  ;;  %p2334_p11 = scmp.lt.u32.totalorder %s2327_s15, %s3266_s3 }
  0x24   : > { %p2330_p9 = pnand %p2803_p8, %p2328_p7 }
  0x26   : > { %p2331_p10 = pneg %p2330_p9 }
  0x28   : > { %p2336_p12 = pnand %p2334_p11, %p2331_p10 }
  0x2a   : > { %2339 = shalt.err (!%p2336_p12)
}
  0x2b   : > { %s2340_s13 = scalar_lea.vmem %s2780_s26, 512  ;;  %p2348_p4 = scmp.lt.s32.totalorder %s2780_s26, %s2780_s26 }
  0x2c   : > { %p2341_p13 = scmp.ne.s32.totalorder %s2780_s26, %s2340_s13  ;;  %p2349_p5 = scmp.lt.s32.totalorder %s2340_s13, %s2340_s13 }
  0x2e   : > { %p2343_p0 = pnand %p2341_p13, %p2803_p8  ;;  %p2350_p7 = por %p2349_p5, %p2348_p4 }
  0x30   : > { %p2344_p2 = pneg %p2343_p0 }
  0x32   : > { %p2351_p9 = pnand %p2350_p7, %p2344_p2 }
  0x34   : > { %2354 = shalt.err (!%p2351_p9)
}
  0x35   : > { %s3248_s14 = smov 128   ;;  %s3250_s15 = smov 8  }
  0x36   : > { %2188 = dma.hbm_to_vmem [thread:$0]  (!%p2787_p6), %s3266_s3, 512, %s2780_s26, [#allocation10], %s3248_s14, %s3248_s14, %s3250_s15  }
  0x37   : > { %s3268_s4 = sld [smem:[#allocation32_spill]] }
  0x3d   : > { %s2355_s13 = scalar_lea.hbm %s3268_s4, 16 }
  0x3e   : > { %p2356_p5 = scmp.ne.s32.totalorder %s3268_s4, %s2355_s13  ;;  %p2362_p12 = scmp.lt.u32.totalorder %s2355_s13, %s3268_s4 }
  0x40   : > { %p2358_p10 = pnand %p2356_p5, %p2803_p8 }
  0x42   : > { %p2359_p11 = pneg %p2358_p10 }
  0x44   : > { %p2364_p13 = pnand %p2362_p12, %p2359_p11 }
  0x46   : > { %2367 = shalt.err (!%p2364_p13)
}
  0x47   : > { %s2368_s26 = scalar_lea.vmem %s2791_s29, 16  ;;  %s2375_s9 = scalar_lea.vmem %s2791_s29, 32 }
  0x48   : > { %p2369_p0 = scmp.ne.s32.totalorder %s2791_s29, %s2368_s26  ;;  %p2376_p7 = scmp.lt.s32.totalorder %s2791_s29, %s2791_s29 }
  0x49   : > { %p2377_p9 = scmp.lt.s32.totalorder %s2375_s9, %s2368_s26 }
  0x4a   : > { %p2371_p2 = pnand %p2369_p0, %p2803_p8 }
  0x4b   : > { %p2378_p5 = por %p2377_p9, %p2376_p7 }
  0x4c   : > { %p2372_p4 = pneg %p2371_p2 }
  0x4e   : > { %p2379_p10 = pnand %p2378_p5, %p2372_p4 }
  0x50   : > { %2382 = shalt.err (!%p2379_p10)
}
  0x51   : > { %2191 = dma.hbm_to_vmem [thread:$0]  (!%p2787_p6), %s3268_s4, 16, %s2791_s29, [#allocation13]  }
  0x52   : > { %s3269_s6 = sld [smem:[#allocation34_spill]] }
  0x58   : > { %s2383_s25 = scalar_lea.hbm %s3269_s6, 16 }
  0x59   : > { %p2384_p11 = scmp.ne.s32.totalorder %s3269_s6, %s2383_s25  ;;  %p2390_p0 = scmp.lt.u32.totalorder %s2383_s25, %s3269_s6 }
  0x5b   : > { %p2386_p12 = pnand %p2384_p11, %p2803_p8 }
  0x5d   : > { %p2387_p13 = pneg %p2386_p12 }
  0x5f   : > { %p2392_p2 = pnand %p2390_p0, %p2387_p13 }
  0x61   : > { %2395 = shalt.err (!%p2392_p2)
}
  0x62   : > { %s2396_s9 = scalar_lea.vmem %s377_s12, 16  ;;  %s2403_s29 = scalar_lea.vmem %s377_s12, 32 }
  0x63   : > { %p2397_p4 = scmp.ne.s32.totalorder %s377_s12, %s2396_s9  ;;  %p2404_p5 = scmp.lt.s32.totalorder %s377_s12, %s377_s12 }
  0x64   : > { %p2405_p10 = scmp.lt.s32.totalorder %s2403_s29, %s2396_s9 }
  0x65   : > { %p2399_p7 = pnand %p2397_p4, %p2803_p8 }
  0x66   : > { %p2406_p1 = por %p2405_p10, %p2404_p5 }
  0x67   : > { %p2400_p9 = pneg %p2399_p7 }
  0x69   : > { %p2407_p3 = pnand %p2406_p1, %p2400_p9 }
  0x6b   : > { %2410 = shalt.err (!%p2407_p3)
}
  0x6c   : > { %2197 = dma.hbm_to_vmem [thread:$0]  (!%p2787_p6), %s3269_s6, 16, %s377_s12, [#allocation16]  }
  0x6d   : > { %s2664_s20 = smov [#allocation14]   ;;  %s2665_s25 = smov [#allocation17]  }
  0x6e   : > { %s362_s16 = sshll.u32 %s2664_s20, 4  ;;  %s386_s28 = sshll.u32 %s2665_s25, 4  ;;  %s363_s16 = int_to_ptr.vmem [resolvable:$true] %s362_s16  ;;  %s387_s28 = int_to_ptr.vmem [resolvable:$true] %s386_s28 }
  0x6f   : > { %s3270_s5 = sld [smem:[#allocation33_spill]] }
  0x75   : > { %s2411_s26 = scalar_lea.hbm %s3270_s5, 384 }
  0x76   : > { %p2412_p1 = scmp.ne.s32.totalorder %s3270_s5, %s2411_s26  ;;  %p2418_p12 = scmp.lt.u32.totalorder %s2411_s26, %s3270_s5 }
  0x78   : > { %p2414_p3 = pnand %p2412_p1, %p2803_p8 }
  0x7a   : > { %p2415_p11 = pneg %p2414_p3 }
  0x7c   : > { %p2420_p13 = pnand %p2418_p12, %p2415_p11 }
  0x7e   : > { %2423 = shalt.err (!%p2420_p13)
}
  0x7f   : > { %s2424_s12 = scalar_lea.vmem %s363_s16, 384  ;;  %p2432_p7 = scmp.lt.s32.totalorder %s363_s16, %s363_s16 }
  0x80   : > { %p2425_p0 = scmp.ne.s32.totalorder %s363_s16, %s2424_s12  ;;  %p2433_p9 = scmp.lt.s32.totalorder %s2424_s12, %s2424_s12 }
  0x82   : > { %p2427_p2 = pnand %p2425_p0, %p2803_p8  ;;  %p2434_p5 = por %p2433_p9, %p2432_p7 }
  0x84   : > { %p2428_p4 = pneg %p2427_p2 }
  0x86   : > { %p2435_p10 = pnand %p2434_p5, %p2428_p4 }
  0x88   : > { %2438 = shalt.err (!%p2435_p10)
}
  0x89   : > { %s3271_s10 = smov 128   ;;  %s3272_s7 = sld [smem:[#allocation35_spill]] }
  0x8a   : > { %2194 = dma.hbm_to_vmem [thread:$0]  (!%p2787_p6), %s3270_s5, 384, %s363_s16, [#allocation13], %s3271_s10, %s3271_s10, %s3250_s15  }
  0x8f   : > { %s2439_s13 = scalar_lea.hbm %s3272_s7, 384 }
  0x90   : > { %p2440_p1 = scmp.ne.s32.totalorder %s3272_s7, %s2439_s13  ;;  %p2446_p12 = scmp.lt.u32.totalorder %s2439_s13, %s3272_s7 }
  0x92   : > { %p2442_p3 = pnand %p2440_p1, %p2803_p8 }
  0x94   : > { %p2443_p11 = pneg %p2442_p3 }
  0x96   : > { %p2448_p13 = pnand %p2446_p12, %p2443_p11 }
  0x98   : > { %2451 = shalt.err (!%p2448_p13)
}
  0x99   : > { %s2452_s12 = scalar_lea.vmem %s387_s28, 384  ;;  %p2460_p7 = scmp.lt.s32.totalorder %s387_s28, %s387_s28 }
  0x9a   : > { %p2453_p0 = scmp.ne.s32.totalorder %s387_s28, %s2452_s12  ;;  %p2461_p9 = scmp.lt.s32.totalorder %s2452_s12, %s2452_s12 }
  0x9c   : > { %p2455_p2 = pnand %p2453_p0, %p2803_p8  ;;  %p2462_p5 = por %p2461_p9, %p2460_p7 }
  0x9e   : > { %p2456_p4 = pneg %p2455_p2 }
  0xa0   : > { %p2463_p10 = pnand %p2462_p5, %p2456_p4 }
  0xa2   : > { %2466 = shalt.err (!%p2463_p10)
}
  0xa3   : > { %2200 = dma.hbm_to_vmem [thread:$0]  (!%p2787_p6), %s3272_s7, 384, %s387_s28, [#allocation16], %s3271_s10, %s3271_s10, %s3250_s15  }
  0xa4   : > { %s2666_s20 = smov [#allocation18]   ;;  %s2467_s26 = scalar_lea.hbm %s3239_s8, 16 }
  0xa5   : > { %s400_s25 = sshll.u32 %s2666_s20, 4  ;;  %p2468_p1 = scmp.ne.s32.totalorder %s3239_s8, %s2467_s26  ;;  %s401_s25 = int_to_ptr.vmem [resolvable:$true] %s400_s25 }
  0xa6   : > { %p2474_p12 = scmp.lt.u32.totalorder %s2467_s26, %s3239_s8 }
  0xa7   : > { %p2470_p3 = pnand %p2468_p1, %p2803_p8 }
  0xa9   : > { %p2471_p11 = pneg %p2470_p3 }
  0xab   : > { %p2476_p13 = pnand %p2474_p12, %p2471_p11 }
  0xad   : > { %2479 = shalt.err (!%p2476_p13)
}
  0xae   : > { %s2480_s28 = scalar_lea.vmem %s401_s25, 16  ;;  %s2487_s16 = scalar_lea.vmem %s401_s25, 32 }
  0xaf   : > { %p2481_p0 = scmp.ne.s32.totalorder %s401_s25, %s2480_s28  ;;  %p2488_p7 = scmp.lt.s32.totalorder %s401_s25, %s401_s25 }
  0xb0   : > { %p2489_p9 = scmp.lt.s32.totalorder %s2487_s16, %s2480_s28 }
  0xb1   : > { %p2483_p2 = pnand %p2481_p0, %p2803_p8 }
  0xb2   : > { %p2490_p5 = por %p2489_p9, %p2488_p7 }
  0xb3   : > { %p2484_p4 = pneg %p2483_p2 }
  0xb5   : > { %p2491_p10 = pnand %p2490_p5, %p2484_p4 }
  0xb7   : > { %2494 = shalt.err (!%p2491_p10)
}
  0xb8   : > { %2203 = dma.hbm_to_vmem [thread:$0]  (!%p2787_p6), %s3239_s8, 16, %s401_s25, [#allocation19]  }
  0xb9   : > { %s1947_s11 = sadd.s32 4294967294, %s2657_s22   ;;  %s45_s30 = sadd.s32 1, %s2653_s21 }
  0xba   : > { %p47_p8 = scmp.ge.s32.totalorder %s45_s30, 2  ;;  %s54_s27 = sadd.s32 1, %s2645_s19 }
  0xbb   : > { %p61_p1 = scmp.ne.s32.totalorder %s2645_s19, %s2641_s18  ;;  %p62_p3 = scmp.eq.s32.totalorder %s2657_s22, 0 }
  0xbc   : > { %s3307_s30 = smov (%p47_p8, %s45_s30), 0  ;;  %p67_p12 = scmp.ne.s32.totalorder %s2641_s18, %s2637_s17 }
  0xbd   : > { %p2938_p11 = por %p62_p3, %p61_p1  ;;  %s49_s25 = ssub.s32 %s2653_s21, %s3307_s30 }
  0xbe   : > { %p313_p6 = scmp.eq.s32.totalorder %s2771_s23, 1  ;;  %p52_p13 = scmp.eq.s32.totalorder %s49_s25, 0 }
  0xbf   : > { %p3274_p0 = scmp.eq.s32.totalorder %s2771_s23, 0  ;;  %p319_p7 = scmp.eq.s32.totalorder %s1947_s11, 1 }
  0xc0   : > { %p2953_p4 = por %p313_p6, %p61_p1  ;;  %p2221_p5 = scmp.lt.s32.totalorder %s2657_s22, 2 }
  0xc1   : > { %p2949_p2 = por %p3274_p0, %p67_p12  ;;  %p2960_p9 = por %p319_p7, %p67_p12 }
  0xc2   : > { %s3276_s9 = scalar_select %p2953_p4, 1, 0 }
  0xc3   : > { %s3275_s26 = scalar_select %p2949_p2, 1, 0 }
  0xc4   : > { %s2958_s29 = scalar_select %p52_p13, %s2645_s19, %s54_s27  }
  0xc5   : > { %s3277_s2 = scalar_select %p2960_p9, 1, 0 }
  0xc6   : > { %s2966_s12 = sand.u32 1, %s2645_s19   ;;  %s2007_s28 = sshll.u32 %s2653_s21, 8 }
  0xc7   : > { %s1956_s16 = sshll.u32 %s2966_s12, 4  ;;  %s3278_s0 = sld [smem:[#allocation29_spill]] }
  0xc8   : > { %s421_s11 = scalar_lea.vmem [#allocation6], %s1956_s16  ;;  %p2977_p10 = pnand %p2221_p5, %p2938_p11 }
  0xc9   : > { %s430_s27 = sshll.u32 %s421_s11, 4  ;;  %s418_s4 = scalar_lea.sflag [#allocation7], %s2966_s12  ;;  %s2981_s27 = int_to_ptr.vmem [resolvable:$true] %s430_s27 }
  0xca   : > { %p2497_p1 = pneg %p2977_p10 }
  0xcd   : > { %s2973_s25 = scalar_lea.hbm %s3278_s0, %s2007_s28  ;;  %s2500_s16 = scalar_lea.hbm %s3278_s0, 512 }
  0xce   : > { %s2495_s14 = scalar_lea.hbm %s2973_s25, 256  ;;  %p2501_p11 = scmp.lt.u32.totalorder %s2973_s25, %s3278_s0 }
  0xcf   : > { %p2496_p8 = scmp.ne.s32.totalorder %s2973_s25, %s2495_s14  ;;  %p2502_p6 = scmp.lt.u32.totalorder %s2500_s16, %s2495_s14 }
  0xd0   : > { %p2504_p0 = scmp.lt.u32.totalorder %s2495_s14, %s2973_s25 }
  0xd1   : > { %p2498_p3 = pnand %p2497_p1, %p2496_p8  ;;  %p2503_p13 = por %p2502_p6, %p2501_p11 }
  0xd3   : > { %p2499_p12 = pneg %p2498_p3  ;;  %p2505_p7 = por %p2504_p0, %p2503_p13 }
  0xd5   : > { %p2506_p5 = pnand %p2505_p7, %p2499_p12 }
  0xd7   : > { %2509 = shalt.err (!%p2506_p5)
}
  0xd8   : > { %s2510_s3 = scalar_lea.vmem %s2981_s27, 256  ;;  %s2667_s28 = smov [#allocation6]  }
  0xd9   : > { %p2511_p8 = scmp.ne.s32.totalorder %s2981_s27, %s2510_s3  ;;  %s2515_s13 = sshll.u32 %s2667_s28, 4  ;;  %s2516_s13 = int_to_ptr.vmem [resolvable:$false] %s2515_s13 }
  0xda   : > { %s2517_s20 = scalar_lea.vmem %s2516_s13, 512  ;;  %p2518_p4 = scmp.lt.s32.totalorder %s2981_s27, %s2516_s13 }
  0xdb   : > { %p2513_p3 = pnand %p2511_p8, %p2497_p1  ;;  %p2519_p11 = scmp.lt.s32.totalorder %s2517_s20, %s2510_s3 }
  0xdd   : > { %p2514_p9 = pneg %p2513_p3  ;;  %p2520_p6 = por %p2519_p11, %p2518_p4 }
  0xdf   : > { %p2521_p13 = pnand %p2520_p6, %p2514_p9 }
  0xe1   : > { %2524 = shalt.err (!%p2521_p13)
}
  0xe2   : > { %s3280_s14 = smov 8   ;;  %s1959_s16 = sshll.u32 %s2966_s12, 3 }
  0xe3   : > { %2207 = dma.hbm_to_vmem [thread:$0]  (!%p2977_p10), %s2973_s25, 256, %s2981_s27, %s418_s4, %s3271_s10, %s3271_s10, %s3280_s14  }
  0xe4   : > { %s1960_s11 = sshll.u32 %s2653_s21, 7  ;;  %s444_s20 = scalar_lea.vmem [#allocation9], %s1959_s16 }
  0xe5   : > { %s3020_s13 = scalar_lea.hbm %s3232_s1, %s1960_s11  ;;  %s451_s0 = sshll.u32 %s444_s20, 4  ;;  %s452_s0 = int_to_ptr.vmem [resolvable:$true] %s451_s0 }
  0xe6   : > { %s3281_s5 = sand.u32 1, %s2657_s22   ;;  %s2525_s7 = scalar_lea.hbm %s3020_s13, 128 }
  0xe7   : > { %s441_s6 = scalar_lea.sflag [#allocation10], %s3281_s5  ;;  %p2526_p4 = scmp.ne.s32.totalorder %s3020_s13, %s2525_s7 }
  0xe8   : > { %s2530_s12 = scalar_lea.hbm %s3232_s1, 256  ;;  %p2531_p0 = scmp.lt.u32.totalorder %s3020_s13, %s3232_s1 }
  0xe9   : > { %p2528_p9 = pnand %p2526_p4, %p2497_p1  ;;  %p2532_p7 = scmp.lt.u32.totalorder %s2530_s12, %s2525_s7 }
  0xea   : > { %p2534_p8 = scmp.lt.u32.totalorder %s2525_s7, %s3020_s13 }
  0xeb   : > { %p2529_p12 = pneg %p2528_p9  ;;  %p2533_p5 = por %p2532_p7, %p2531_p0 }
  0xed   : > { %p2535_p3 = por %p2534_p8, %p2533_p5 }
  0xef   : > { %p2536_p11 = pnand %p2535_p3, %p2529_p12 }
  0xf1   : > { %2539 = shalt.err (!%p2536_p11)
}
  0xf2   : > { %s2540_s5 = scalar_lea.vmem %s452_s0, 128  ;;  %s2668_s14 = smov [#allocation9]  }
  0xf3   : > { %p2541_p6 = scmp.ne.s32.totalorder %s452_s0, %s2540_s5  ;;  %s2545_s16 = sshll.u32 %s2668_s14, 4  ;;  %s2546_s16 = int_to_ptr.vmem [resolvable:$false] %s2545_s16 }
  0xf4   : > { %s2547_s11 = scalar_lea.vmem %s2546_s16, 256  ;;  %p2548_p9 = scmp.lt.s32.totalorder %s452_s0, %s2546_s16 }
  0xf5   : > { %p2543_p13 = pnand %p2541_p6, %p2497_p1  ;;  %p2549_p2 = scmp.lt.s32.totalorder %s2547_s11, %s2540_s5 }
  0xf7   : > { %p2544_p4 = pneg %p2543_p13  ;;  %p2550_p0 = por %p2549_p2, %p2548_p9 }
  0xf9   : > { %p2551_p7 = pnand %p2550_p0, %p2544_p4 }
  0xfb   : > { %2554 = shalt.err (!%p2551_p7)
}
  0xfc   : > { %2210 = dma.hbm_to_vmem [thread:$0]  (!%p2977_p10), %s3020_s13, 128, %s452_s0, %s441_s6  }
  0xfd   : > { %p3282_p12 = scmp.ne.s32.totalorder %s3264_s24, 0 }
  0xfe   : > { %s3046_s7 = sand.u32 (!%p3282_p12), 1, %s2641_s18   ;;  %p3283_p2 = scmp.ne.s32.totalorder (!%p3282_p12), %s3275_s26, 0 }
  0xff   : > { %466 = sbr.rel (%p3282_p12) target bundleno = 1587 (0x633), region = 64  ;;  %s1962_s3 = sshll.u32 (!%p3282_p12), %s3046_s7, 4 }
 0x100   : > { %s469_s28 = scalar_lea.sflag (!%p3282_p12), [#allocation7], %s3046_s7  ;;  %s3052_s20 = scalar_lea.vmem (!%p3282_p12), [#allocation6], %s1962_s3 }
 0x106   : > { %2608 = dma.done.wait (%p3283_p2), %s469_s28, 256  }
 0x107   : > { %2610 = vsyncadd (%p3283_p2), %s469_s28, 4294967040  ;;  %s477_s0 = sand.u32 1, %s2771_s23   ;;  %s1963_s6 = sshll.u32 %s3046_s7, 3 }
 0x108   : > { %s478_s24 = scalar_lea.sflag [#allocation10], %s477_s0  ;;  %s3060_s15 = scalar_lea.vmem [#allocation9], %s1963_s6 }
 0x109   : > { %2612 = dma.done.wait (%p3283_p2), %s478_s24, 128  }
 0x10a   : > { %2614 = vsyncadd (%p3283_p2), %s478_s24, 4294967168  ;;  %p3284_p10 = scmp.eq.s32.totalorder %s2771_s23, 0 }
 0x10c   : > { %2616 = dma.done.wait (%p3284_p10), [#allocation10], 512   ;;  %p3285_p1 = pmov %p3284_p10 }
 0x10e   : > { %2618 = vsyncadd (%p3285_p1), [#allocation10], 4294966784  ;;  %p3286_p5 = pmov %p3285_p1 }
 0x10f   : > { %p3287_p8 = pmov %p3285_p1 }
 0x110   : > { %2620 = dma.done.wait (%p3286_p5), [#allocation13], 400  }
 0x111   : > { %2622 = vsyncadd (%p3287_p8), [#allocation13], 4294966896  ;;  %p3288_p3 = pmov %p3285_p1 }
 0x112   : > { %p3289_p11 = pmov %p3285_p1 }
 0x113   : > { %2624 = dma.done.wait (%p3288_p3), [#allocation16], 400  }
 0x114   : > { %2626 = vsyncadd (%p3289_p11), [#allocation16], 4294966896  ;;  %p3290_p6 = pmov %p3285_p1 }
 0x115   : > { %p3291_p13 = pmov %p3285_p1 }
 0x116   : > { %2628 = dma.done.wait (%p3290_p6), [#allocation19], 16  }
 0x117   : > { %2630 = vsyncadd (%p3291_p13), [#allocation19], 4294967280  ;;  %v2669_v0 = vmov 0.0|0.0   ;;  %vm2670_vm0 = vmmov 0   ;;  %v2671_v1 = vmov 0.0   ;;  %v560_v2 = vld [vmem:[#allocation11] sm:$0xff] }
 0x118   : > { %2141 = vmatprep.subr.bf16.mxu1 %v2669_v0  ;;  %2070 = vmatprep.mubr.msk.f32.mxu1 %vm2670_vm0, %v2671_v1  ;;  %v561_v3 = vld [vmem:[#allocation11 + $0x8] sm:$0xff]  ;;  %vm571_vm1 = vcmask 261120   ;;  %v562_v7 = vld [vmem:[#allocation11 + $0x10] sm:$0xff]  ;;  %v563_v8 = vld [vmem:[#allocation11 + $0x18] sm:$0xff]  ;;  %vm663_vm2 = vcmask 195584   ;;  %vm832_vm3 = vcmask 64512  }
 0x119   : > { %v653_v4 = vld [vmem:[#allocation14] sm:$0xff]  ;;  %v2133_v5 = vpack.c.bf16 %v561_v3, %v560_v2  ;;  %v654_v6 = vld [vmem:[#allocation14 + $0x8] sm:$0xff]  ;;  %v2137_v10 = vpack.c.bf16 %v563_v8, %v562_v7  ;;  %v655_v12 = vld [vmem:[#allocation14 + $0x10] sm:$0xff]  ;;  %s2672_s23 = smov 112   ;;  %s2673_s26 = smov 120   ;;  %vm1231_vm4 = vcmask 130112  }
 0x11a   : > { %v2142_v9 = vpack.c.bf16 %v654_v6, %v653_v4  ;;  %v557_v11 = vld [vmem:[%s3052_s20] sm:$0xff]  ;;  %v558_v14 = vld [vmem:[%s3052_s20 + $0x8] sm:$0xff]  ;;  %s2674_s13 = smov 104   ;;  %s3292_s4 = sld [smem:[#allocation28_spill]]  ;;  %vm1443_vm5 = vcmask 195712   ;;  %vm1655_vm6 = vcmask 261312  }
 0x11b   : > { %2134 = vmatprep.subr.bf16.mxu0 %v2133_v5  ;;  %2061 = vmatprep.mubr.msk.f32.mxu0 %vm571_vm1, %v557_v11  ;;  %v559_v13 = vld [vmem:[%s3060_s15] sm:$0xff]  ;;  %v738_v16 = vld [vmem:[#allocation17 + $0x8] sm:$0xff]  ;;  %v1971_v21 = vld [vmem:[#allocation12] ss:$0 sm:$0xff]  ;;  %s3293_s27 = sld [smem:[#allocation30_spill]]  ;;  %s3294_s11 = sld [smem:[#allocation36_spill]] }
 0x11c   : > { %2143 = vmatpush3.bf16.msra.mxu1 %v2142_v9  ;;  %2136 = vmatpush3.bf16.msra.mxu0 %v2133_v5  ;;  %v737_v15 = vld [vmem:[#allocation17] sm:$0xff]  ;;  %v739_v18 = vld [vmem:[#allocation17 + $0x10] sm:$0xff]  ;;  %v1974_v19 = vld [vmem:[#allocation15] ss:$0 sm:$0xff]  ;;  %s2675_s0 = smov 8   ;;  %s3295_s25 = sld [smem:[#allocation37_spill]] }
 0x11d   : > { %2068 = vmatprep.subr.mxu1 %v2671_v1  ;;  %2138 = vmatprep.subr.bf16.mxu0 %v2137_v10  ;;  %v2145_v17 = vpack.c.bf16 %v738_v16, %v737_v15  ;;  %v1976_v31 = vld [vmem:[#allocation18] ss:$0 sm:$0xff]  ;;  %s3296_s20 = sld [smem:[#allocation38_spill]]  ;;  %p3298_p0 = scmp.ne.s32.totalorder %s3276_s9, 0 }
 0x11e   : > { %s2678_s15 = smov [#allocation20]  }
 0x120   : > { %2069 = vmatpush3.msra.mxu1 %v655_v12  ;;  %2140 = vmatpush3.bf16.msra.mxu0 %v2137_v10  ;;  %p553_p4 = scmp.lt.s32.totalorder %s3292_s4, 1  ;;  %s2008_s14 = sshll.u32 %s3292_s4, 8 }
 0x121   : > { %2071 = vmatmul.mubr.msk.f32.vlgmr.msra.gmra.mrb[0].mxu1 %vm663_vm2, %v559_v13  ;;  %2144 = vmatprep.subr.bf16.mxu1 %v2669_v0 }
 0x122   : > { %2079 = vmatprep.mubr.msk.f32.mxu1 %vm2670_vm0, %v2671_v1  ;;  %2146 = vmatpush3.bf16.msra.mxu1 %v2145_v17  ;;  %s554_s10 = scalar_select %p553_p4, %s3292_s4, 1 }
 0x123   : > { %2062 = vmatmul.mubr.msk.f32.vlgmr.msra.gmra.mrb[0].mxu0 %vm571_vm1, %v558_v14  ;;  %2077 = vmatprep.subr.mxu1 %v2671_v1  ;;  %s3297_s6 = smov %s3296_s20  ;;  %s3179_s24 = scalar_lea.hbm %s3296_s20, %s2008_s14 }
 0x124   : > { %s555_s5 = scalar_lea.vmem %s3293_s27, %s554_s10  ;;  %s551_s27 = scalar_lea.vmem [#allocation20], %s1962_s3 }
 0x125   : > { %v1978_v45 = vld [vmem:[%s555_s5] ss:$0 sm:$0xff]  ;;  %s1770_s5 = sshll.u32 %s551_s27, 4  ;;  %s1755_s3 = scalar_lea.sflag [#allocation8], %s3046_s7  ;;  %s3174_s5 = int_to_ptr.vmem [resolvable:$true] %s1770_s5 }
 0x126   : > { %2078 = vmatpush3.msra.mxu1 %v739_v18  ;;  %s2555_s4 = scalar_lea.vmem %s3174_s5, 256 }
 0x127   : > { %2080 = vmatmul.mubr.msk.f32.vlgmr.msra.gmra.mrb[2].mxu1 %vm663_vm2, %v559_v13  ;;  %p2556_p9 = scmp.ne.s32.totalorder %s3174_s5, %s2555_s4 }
 0x129   : > { %p2557_p7 = pnand %p2556_p9, %p3298_p0 }
 0x12b   : > { %p2558_p12 = pneg %p2557_p7 }
 0x1f4   : > { %v733_v20 = vpop.f32.mrb[0].mxu1 }
 0x1f5   : > { %v734_v22 = vadd.f32 %v1974_v19, %v733_v20  ;;  %v2072_v23 = vpop.f32.mrb[1].mxu1 }
 0x1f6   : > { %v2063_v24 = vpop.f32.mrb[0].mxu0 }
 0x1f7   : > { %819 = vst.msk [vmem:[#allocation3] sm:$0xff] %vm571_vm1, %v734_v22  ;;  %v650_v25 = vadd.f32 %v2063_v24, %v1971_v21  ;;  %v644_v26 = vpop.f32.mrb[1].mxu0 }
 0x1f8   : > { %v645_v27 = vadd.f32 %v1971_v21, %v644_v26 }
 0x1f9   : > { %818 = vst.msk [vmem:[#allocation2 + $0x8] sm:$0xff] %vm571_vm1, %v650_v25 }
 0x1fa   : > { %817 = vst.msk [vmem:[#allocation2] sm:$0xff] %vm571_vm1, %v645_v27  ;;  %v813_v32 = vpop.f32.mrb[2].mxu1 }
 0x1fb   : > { %v814_v33 = vadd.f32 %v1976_v31, %v813_v32  ;;  %v2081_v34 = vpop.f32.mrb[3].mxu1 }
 0x1fd   : > { %820 = vst.msk [vmem:[#allocation4] sm:$0xff] %vm571_vm1, %v814_v33 }
 0x1fe   : > { %v1236_v28 = vld [vmem:[#allocation3] sm:$0xff] }
 0x1ff   : > { %1245 = vrot.lane.b32.xlu1 %v1236_v28, %s2672_s23  ;;  %1033 = vrot.lane.b32.xlu0 %v1236_v28, %s2673_s26 }
 0x200   : > { %2082 = vmatprep.subr.msk.mxu0 %vm832_vm3, %v1236_v28  ;;  %v1023_v29 = vld [vmem:[#allocation2 + $0x8] sm:$0xff] }
 0x201   : > { %2083 = vmatpush3.xpose.msk.msra.mxu0 %vm832_vm3, %v1236_v28  ;;  %v1022_v30 = vld [vmem:[#allocation2] sm:$0xff] }
 0x202   : > { %2084 = vmatprep.mubr.msk.f32.mxu0 %vm832_vm3, %v1022_v30 }
 0x203   : > { %1030 = vrot.lane.b32.xlu1 %v1023_v29, %s2673_s26  ;;  %1028 = vrot.lane.b32.xlu0 %v1022_v30, %s2673_s26 }
 0x204   : > { %2085 = vmatmul.mubr.msk.f32.vlgmr.msra.gmra.mrb[2].mxu0 %vm832_vm3, %v1023_v29  ;;  %v825_v44 = vld [vmem:[#allocation4] sm:$0xff] }
 0x205   : > { %2087 = vmatprep.subr.mxu0 %v825_v44 }
 0x206   : > { %2088 = vmatpush3.msra.mxu0 %v825_v44 }
 0x207   : > { %1242 = vrot.lane.b32.xlu1 %v1023_v29, %s2672_s23  ;;  %1240 = vrot.lane.b32.xlu0 %v1022_v30, %s2672_s23 }
 0x20b   : > { %1452 = vrot.lane.b32.xlu1 %v1022_v30, %s2674_s13  ;;  %1457 = vrot.lane.b32.xlu0 %v1236_v28, %s2674_s13 }
 0x20f   : > { %1454 = vrot.lane.b32.xlu0 %v1023_v29, %s2674_s13 }
 0x271   : > { %v1246_v35 = vpop.permute.xlu1 %1245  ;;  %v1034_v36 = vpop.permute.xlu0 %1033 }
 0x272   : > { %2092 = vmatprep.subr.msk.mxu1 %vm832_vm3, %v1034_v36 }
 0x273   : > { %2093 = vmatpush3.xpose.msk.msra.mxu1 %vm832_vm3, %v1034_v36 }
 0x274   : > { %2102 = vmatprep.subr.msk.mxu1 %vm832_vm3, %v1246_v35 }
 0x275   : > { %v1031_v37 = vpop.permute.xlu1 %1030  ;;  %v1029_v38 = vpop.permute.xlu0 %1028 }
 0x276   : > { %2094 = vmatprep.mubr.msk.f32.mxu1 %vm832_vm3, %v1029_v38 }
 0x277   : > { %2095 = vmatmul.mubr.msk.f32.vlgmr.msra.gmra.mrb[4].mxu1 %vm832_vm3, %v1031_v37 }
 0x278   : > { %2103 = vmatpush3.xpose.msk.msra.mxu1 %vm832_vm3, %v1246_v35 }
 0x279   : > { %v1243_v39 = vpop.permute.xlu1 %1242  ;;  %v1241_v40 = vpop.permute.xlu0 %1240 }
 0x27a   : > { %2104 = vmatprep.mubr.msk.f32.mxu1 %vm832_vm3, %v1241_v40 }
 0x27b   : > { %2105 = vmatmul.mubr.msk.f32.vlgmr.msra.gmra.mrb[6].mxu1 %vm832_vm3, %v1243_v39 }
 0x27d   : > { %v1453_v41 = vpop.permute.xlu1 %1452  ;;  %v1458_v42 = vpop.permute.xlu0 %1457 }
 0x27e   : > { %2112 = vmatprep.subr.msk.mxu1 %vm832_vm3, %v1458_v42  ;;  %2114 = vmatprep.mubr.msk.f32.mxu1 %vm832_vm3, %v1453_v41 }
 0x27f   : > { %2113 = vmatpush3.xpose.msk.msra.mxu1 %vm832_vm3, %v1458_v42 }
 0x281   : > { %v1455_v43 = vpop.permute.xlu0 %1454 }
 0x282   : > { %2115 = vmatmul.mubr.msk.f32.vlgmr.msra.gmra.mrb[8].mxu1 %vm832_vm3, %v1455_v43 }
 0x2d7   : > { %v2086_v46 = vpop.f32.mrb[2].mxu0 }
 0x2d8   : > { %v914_v47 = vadd.f32 %v2086_v46, %v1978_v45  ;;  %v908_v48 = vpop.f32.mrb[3].mxu0 }
 0x2d9   : > { %v909_v49 = vadd.f32 %v1978_v45, %v908_v48 }
 0x2da   : > { %v920_v50 = vsel %vm832_vm3, %v914_v47, -inf }
 0x2db   : > { %921 = vmax.xlane.f32.xlu0 %v920_v50  ;;  %v917_v51 = vsel %vm832_vm3, %v909_v49, -inf }
 0x2dc   : > { %918 = vmax.xlane.f32.xlu1 %v917_v51 }
 0x34a   : > { %v2096_v52 = vpop.f32.mrb[4].mxu1 }
 0x34b   : > { %v1113_v53 = vadd.f32 %v2096_v52, %v1978_v45  ;;  %v1107_v54 = vpop.f32.mrb[5].mxu1 }
 0x34c   : > { %v1108_v55 = vadd.f32 %v1978_v45, %v1107_v54 }
 0x34d   : > { %v1119_v56 = vsel %vm832_vm3, %v1113_v53, -inf }
 0x34e   : > { %v2106_v57 = vpop.f32.mrb[6].mxu1  ;;  %1120 = vmax.xlane.f32.xlu1 %v1119_v56  ;;  %v1116_v58 = vsel %vm832_vm3, %v1108_v55, -inf }
 0x34f   : > { %v1325_v59 = vadd.f32 %v2106_v57, %v1978_v45  ;;  %v1319_v60 = vpop.f32.mrb[7].mxu1  ;;  %1117 = vmax.xlane.f32.xlu0 %v1116_v58 }
 0x350   : > { %v1320_v61 = vadd.f32 %v1978_v45, %v1319_v60 }
 0x351   : > { %v1331_v62 = vsel %vm832_vm3, %v1325_v59, -inf }
 0x352   : > { %1332 = vmax.xlane.f32.xlu1 %v1331_v62  ;;  %v1328_v63 = vsel %vm832_vm3, %v1320_v61, -inf }
 0x353   : > { %1329 = vmax.xlane.f32.xlu0 %v1328_v63 }
 0x355   : > { %v2116_v0 = vpop.f32.mrb[8].mxu1 }
 0x356   : > { %v1537_v1 = vadd.f32 %v2116_v0, %v1978_v45  ;;  %v1531_v2 = vpop.f32.mrb[9].mxu1 }
 0x357   : > { %v1532_v3 = vadd.f32 %v1978_v45, %v1531_v2 }
 0x358   : > { %v1543_v4 = vsel %vm832_vm3, %v1537_v1, -inf }
 0x359   : > { %1544 = vmax.xlane.f32.xlu1 %v1543_v4  ;;  %v1540_v5 = vsel %vm832_vm3, %v1532_v3, -inf  ;;  %v1660_v4 = vld [vmem:[%s3294_s11] sm:$0xff] }
 0x35a   : > { %1541 = vmax.xlane.f32.xlu0 %v1540_v5  ;;  %v1661_v5 = vld [vmem:[%s3294_s11 + $0x8] sm:$0xff] }
 0x368   : > { %v922_v6 = vpop.xlane.xlu0 %921 }
 0x369   : > { %v924_v7 = vsub.f32 %v914_v47, %v922_v6  ;;  %v919_v8 = vpop.xlane.xlu1 %918 }
 0x36a   : > { %v923_v9 = vsub.f32 %v909_v49, %v919_v8  ;;  %1347 = vrot.lane.b32.xlu1 %v825_v44, %s2672_s23  ;;  %v1662_v8 = vld [vmem:[%s3294_s11 + $0x10] sm:$0xff]  ;;  %s2559_s23 = sshll.u32 %s2678_s15, 4  ;;  %s2560_s23 = int_to_ptr.vmem [resolvable:$false] %s2559_s23 }
 0x36b   : > { %v927_v10 = vmul.f32 1.442695, %v924_v7  ;;  %v2147_v7 = vpack.c.bf16 %v1661_v5, %v1660_v4  ;;  %p2562_p2 = scmp.lt.s32.totalorder %s3174_s5, %s2560_s23 }
 0x36c   : > { %v925_v11 = vmul.f32 1.442695, %v923_v9  ;;  %v1663_v9 = vld [vmem:[%s3294_s11 + $0x18] sm:$0xff] }
 0x36d   : > { %2148 = vmatprep.subr.bf16.mxu1 %v2147_v7 }
 0x36e   : > { %2295 = vpow2.f32 %v925_v11  ;;  %1559 = vrot.lane.b32.xlu1 %v825_v44, %s2674_s13  ;;  %2150 = vmatpush3.bf16.msra.mxu1 %v2147_v7  ;;  %s2677_s13 = smov 24  }
 0x36f   : > { %2297 = vpow2.f32 %v927_v10 }
 0x370   : > { %1135 = vrot.lane.b32.xlu0 %v825_v44, %s2673_s26  ;;  %s2676_s26 = smov 16  }
 0x378   : > { %v2296_v12 = vpop.eup %2295 }
 0x379   : > { %v2298_v13 = vpop.eup %2297  ;;  %2089 = vmatprep.mubr.msk.f32.mxu0 %vm832_vm3, %v2296_v12  ;;  %v929_v47 = vsel %vm832_vm3, %v2296_v12, 0.0  ;;  %v2151_v12 = vpack.c.bf16 %v1663_v9, %v1662_v8 }
 0x37a   : > { %2090 = vmatmul.mubr.msk.f32.vlgmr.msra.gmra.mrb[4].mxu0 %vm832_vm3, %v2298_v13  ;;  %v932_v48 = vsel %vm832_vm3, %v2298_v13, 0.0 }
 0x37b   : > { %2152 = vmatprep.subr.bf16.mxu1 %v2151_v12 }
 0x37c   : > { %2154 = vmatpush3.bf16.msra.mxu1 %v2151_v12 }
 0x3db   : > { %v1121_v14 = vpop.xlane.xlu1 %1120 }
 0x3dc   : > { %v1123_v15 = vsub.f32 %v1113_v53, %v1121_v14  ;;  %v1118_v16 = vpop.xlane.xlu0 %1117 }
 0x3dd   : > { %v1122_v17 = vsub.f32 %v1108_v55, %v1118_v16 }
 0x3de   : > { %v1126_v18 = vmul.f32 1.442695, %v1123_v15 }
 0x3df   : > { %v1124_v19 = vmul.f32 1.442695, %v1122_v17  ;;  %v1333_v20 = vpop.xlane.xlu1 %1332 }
 0x3e0   : > { %2299 = vpow2.f32 %v1126_v18  ;;  %v1335_v21 = vsub.f32 %v1325_v59, %v1333_v20  ;;  %v1330_v22 = vpop.xlane.xlu0 %1329 }
 0x3e1   : > { %2301 = vpow2.f32 %v1124_v19  ;;  %v1334_v23 = vsub.f32 %v1320_v61, %v1330_v22 }
 0x3e2   : > { %v1338_v24 = vmul.f32 1.442695, %v1335_v21 }
 0x3e3   : > { %v1336_v25 = vmul.f32 1.442695, %v1334_v23 }
 0x3e4   : > { %2303 = vpow2.f32 %v1338_v24 }
 0x3e5   : > { %2305 = vpow2.f32 %v1336_v25 }
 0x3e6   : > { %v1545_v26 = vpop.xlane.xlu1 %1544 }
 0x3e7   : > { %v1547_v27 = vsub.f32 %v1537_v1, %v1545_v26  ;;  %v1542_v28 = vpop.xlane.xlu0 %1541 }
 0x3e8   : > { %v1546_v29 = vsub.f32 %v1532_v3, %v1542_v28 }
 0x3e9   : > { %v1550_v30 = vmul.f32 1.442695, %v1547_v27 }
 0x3ea   : > { %v2300_v31 = vpop.eup %2299  ;;  %v1548_v32 = vmul.f32 1.442695, %v1546_v29  ;;  %v1348_v33 = vpop.permute.xlu1 %1347 }
 0x3eb   : > { %v2302_v34 = vpop.eup %2301  ;;  %2307 = vpow2.f32 %v1550_v30  ;;  %v1136_v35 = vpop.permute.xlu0 %1135  ;;  %v1131_v36 = vsel %vm832_vm3, %v2300_v31, 0.0 }
 0x3ec   : > { %2309 = vpow2.f32 %v1548_v32  ;;  %2097 = vmatprep.subr.mxu0 %v1136_v35  ;;  %2099 = vmatprep.mubr.msk.f32.mxu0 %vm832_vm3, %v2302_v34  ;;  %v1128_v37 = vsel %vm832_vm3, %v2302_v34, 0.0 }
 0x3ed   : > { %1132 = vadd.xlane.f32.xlu1 %v1131_v36  ;;  %1129 = vadd.xlane.f32.xlu0 %v1128_v37 }
 0x3ee   : > { %v2304_v38 = vpop.eup %2303  ;;  %2098 = vmatpush3.msra.mxu0 %v1136_v35  ;;  %v1560_v39 = vpop.permute.xlu1 %1559 }
 0x3ef   : > { %v2306_v40 = vpop.eup %2305  ;;  %2100 = vmatmul.mubr.msk.f32.vlgmr.msra.gmra.mrb[6].mxu0 %vm832_vm3, %v2300_v31  ;;  %2107 = vmatprep.subr.mxu0 %v1348_v33  ;;  %v1343_v41 = vsel %vm832_vm3, %v2304_v38, 0.0  ;;  %v1999_v31 = vld [vmem:[%s3295_s25] ss:$0 sm:$0xff] }
 0x3f0   : > { %2108 = vmatpush3.msra.mxu0 %v1348_v33  ;;  %2109 = vmatprep.mubr.msk.f32.mxu0 %vm832_vm3, %v2306_v40  ;;  %v1340_v42 = vsel %vm832_vm3, %v2306_v40, 0.0 }
 0x3f1   : > { %2117 = vmatprep.subr.mxu0 %v1560_v39  ;;  %1344 = vadd.xlane.f32.xlu0 %v1343_v41 }
 0x3f3   : > { %2110 = vmatmul.mubr.msk.f32.vlgmr.msra.gmra.mrb[8].mxu0 %vm832_vm3, %v2304_v38 }
 0x3f4   : > { %2118 = vmatpush3.msra.mxu0 %v1560_v39 }
 0x3f5   : > { %v2308_v43 = vpop.eup %2307  ;;  %1341 = vadd.xlane.f32.xlu0 %v1340_v42 }
 0x3f6   : > { %v2310_v44 = vpop.eup %2309  ;;  %v1555_v46 = vsel %vm832_vm3, %v2308_v43, 0.0 }
 0x3f7   : > { %2119 = vmatprep.mubr.msk.f32.mxu0 %vm832_vm3, %v2310_v44  ;;  %v1552_v45 = vsel %vm832_vm3, %v2310_v44, 0.0 }
 0x3f8   : > { %1553 = vadd.xlane.f32.xlu1 %v1552_v45  ;;  %2120 = vmatmul.mubr.msk.f32.vlgmr.msra.gmra.mrb[10].mxu0 %vm832_vm3, %v2308_v43 }
 0x3f9   : > { %1556 = vadd.xlane.f32.xlu0 %v1555_v46 }
 0x3fc   : > { %930 = vadd.xlane.f32.xlu1 %v929_v47 }
 0x3fd   : > { %933 = vadd.xlane.f32.xlu0 %v932_v48 }
 0x44d   : > { %v2091_v49 = vpop.f32.mrb[4].mxu0 }
 0x44e   : > { %v1007_v50 = vpop.f32.mrb[5].mxu0 }
 0x47a   : > { %v1130_v51 = vpop.xlane.xlu0 %1129  ;;  %v1133_v53 = vpop.xlane.xlu1 %1132 }
 0x47e   : > { %v1345_v52 = vpop.xlane.xlu0 %1344 }
 0x482   : > { %v1342_v54 = vpop.xlane.xlu0 %1341 }
 0x485   : > { %v1554_v55 = vpop.xlane.xlu1 %1553 }
 0x486   : > { %v1557_v56 = vpop.xlane.xlu0 %1556 }
 0x489   : > { %v931_v57 = vpop.xlane.xlu1 %930 }
 0x48a   : > { %2311 = vrcp.f32 %v931_v57  ;;  %v934_v58 = vpop.xlane.xlu0 %933 }
 0x48b   : > { %2313 = vrcp.f32 %v934_v58 }
 0x48c   : > { %2315 = vrcp.f32 %v1133_v53 }
 0x48d   : > { %2317 = vrcp.f32 %v1130_v51 }
 0x48e   : > { %2319 = vrcp.f32 %v1345_v52 }
 0x48f   : > { %2321 = vrcp.f32 %v1342_v54 }
 0x490   : > { %2323 = vrcp.f32 %v1554_v55 }
 0x491   : > { %2325 = vrcp.f32 %v1557_v56 }
 0x494   : > { %v2312_v59 = vpop.eup %2311 }
 0x495   : > { %v2314_v60 = vpop.eup %2313  ;;  %v1018_v61 = vmul.f32 %v2312_v59, %v1007_v50 }
 0x496   : > { %v1019_v62 = vmul.f32 %v2314_v60, %v2091_v49  ;;  %v2316_v63 = vpop.eup %2315 }
 0x497   : > { %1020 = vst.msk [vmem:[#allocation5] sm:$0xff] %vm832_vm3, %v1018_v61  ;;  %v2318_v1 = vpop.eup %2317 }
 0x498   : > { %1021 = vst.msk [vmem:[#allocation5 + $0x8] sm:$0xff] %vm832_vm3, %v1019_v62  ;;  %v2320_v10 = vpop.eup %2319 }
 0x499   : > { %v2322_v15 = vpop.eup %2321 }
 0x49a   : > { %v2324_v17 = vpop.eup %2323 }
 0x49b   : > { %v2326_v21 = vpop.eup %2325 }
 0x4c2   : > { %v2101_v0 = vpop.f32.mrb[6].mxu0 }
 0x4c3   : > { %v1222_v2 = vmul.f32 %v2316_v63, %v2101_v0  ;;  %v1210_v3 = vpop.f32.mrb[7].mxu0 }
 0x4c4   : > { %v1221_v6 = vmul.f32 %v2318_v1, %v1210_v3 }
 0x4c5   : > { %1227 = vrot.lane.b32.xlu0 %v1222_v2, %s2675_s0 }
 0x4c6   : > { %1225 = vrot.lane.b32.xlu1 %v1221_v6, %s2675_s0  ;;  %v2111_v11 = vpop.f32.mrb[8].mxu0 }
 0x4c7   : > { %v1434_v13 = vmul.f32 %v2320_v10, %v2111_v11  ;;  %v1422_v14 = vpop.f32.mrb[9].mxu0 }
 0x4c8   : > { %v1433_v18 = vmul.f32 %v2322_v15, %v1422_v14 }
 0x4ca   : > { %1439 = vrot.lane.b32.xlu1 %v1434_v13, %s2676_s26 }
 0x4cb   : > { %v2121_v16 = vpop.f32.mrb[10].mxu0 }
 0x4cc   : > { %v1634_v19 = vpop.f32.mrb[11].mxu0  ;;  %v1646_v22 = vmul.f32 %v2326_v21, %v2121_v16 }
 0x4cd   : > { %v1645_v20 = vmul.f32 %v2324_v17, %v1634_v19 }
 0x4ce   : > { %1437 = vrot.lane.b32.xlu1 %v1433_v18, %s2676_s26  ;;  %s2561_s26 = scalar_lea.vmem %s2560_s23, 512 }
 0x4cf   : > { %1649 = vrot.lane.b32.xlu0 %v1645_v20, %s2677_s13  ;;  %p2563_p10 = scmp.lt.s32.totalorder %s2561_s26, %s2555_s4 }
 0x4d1   : > { %p2564_p1 = por %p2563_p10, %p2562_p2 }
 0x4d2   : > { %1651 = vrot.lane.b32.xlu1 %v1646_v22, %s2677_s13 }
 0x4d3   : > { %p2565_p5 = pnand %p2564_p1, %p2558_p12 }
 0x537   : > { %v1228_v23 = vpop.permute.xlu0 %1227 }
 0x538   : > { %1233 = vst.msk [vmem:[#allocation5 + $0x8] sm:$0xff] %vm1231_vm4, %v1228_v23  ;;  %v1226_v24 = vpop.permute.xlu1 %1225 }
 0x539   : > { %1232 = vst.msk [vmem:[#allocation5] sm:$0xff] %vm1231_vm4, %v1226_v24 }
 0x53c   : > { %v1440_v25 = vpop.permute.xlu1 %1439 }
 0x53d   : > { %1445 = vst.msk [vmem:[#allocation5 + $0x8] sm:$0xff] %vm1443_vm5, %v1440_v25 }
 0x540   : > { %v1438_v26 = vpop.permute.xlu1 %1437 }
 0x541   : > { %1444 = vst.msk [vmem:[#allocation5] sm:$0xff] %vm1443_vm5, %v1438_v26  ;;  %v1650_v27 = vpop.permute.xlu0 %1649 }
 0x542   : > { %1656 = vst.msk [vmem:[#allocation5] sm:$0xff] %vm1655_vm6, %v1650_v27 }
 0x544   : > { %v1652_v28 = vpop.permute.xlu1 %1651 }
 0x545   : > { %1657 = vst.msk [vmem:[#allocation5 + $0x8] sm:$0xff] %vm1655_vm6, %v1652_v28 }
 0x549   : > { %v1658_v29 = vld [vmem:[#allocation5] sm:$0xff] }
 0x54a   : > { %2130 = vmatprep.mubr.msk.f32.mxu1 %vm571_vm1, %v1658_v29 }
 0x54c   : > { %v1659_v30 = vld [vmem:[#allocation5 + $0x8] sm:$0xff] }
 0x54d   : > { %2131 = vmatmul.mubr.msk.f32.vlgmr.msra.gmra.mrb[10].mxu1 %vm571_vm1, %v1659_v30 }
 0x620   : > { %v2132_v32 = vpop.f32.mrb[10].mxu1 }
 0x621   : > { %v1749_v33 = vadd.f32 %v2132_v32, %v1999_v31  ;;  %v1743_v34 = vpop.f32.mrb[11].mxu1 }
 0x622   : > { %v1744_v35 = vadd.f32 %v1999_v31, %v1743_v34 }
 0x623   : > { %1753 = vst.msk [vmem:[%s551_s27 + $0x8] sm:$0xff] %vm571_vm1, %v1749_v33 }
 0x624   : > { %1752 = vst.msk [vmem:[%s551_s27] sm:$0xff] %vm571_vm1, %v1744_v35 }
 0x625   : > { %2568 = shalt.err (!%p2565_p5)
}
 0x626   : > { %s2569_s13 = scalar_lea.hbm %s3179_s24, 256  ;;  %s2573_s25 = scalar_lea.hbm %s3297_s6, 512 }
 0x627   : > { %p2570_p8 = scmp.ne.s32.totalorder %s3179_s24, %s2569_s13  ;;  %p2574_p6 = scmp.lt.u32.totalorder %s3179_s24, %s3297_s6 }
 0x628   : > { %p2575_p13 = scmp.lt.u32.totalorder %s2573_s25, %s2569_s13  ;;  %p2577_p9 = scmp.lt.u32.totalorder %s2569_s13, %s3179_s24 }
 0x629   : > { %p2571_p3 = pnand %p2570_p8, %p3298_p0 }
 0x62a   : > { %p2576_p4 = por %p2575_p13, %p2574_p6 }
 0x62b   : > { %p2572_p11 = pneg %p2571_p3 }
 0x62c   : > { %p2578_p7 = por %p2577_p9, %p2576_p4 }
 0x62e   : > { %p2579_p12 = pnand %p2578_p7, %p2572_p11 }
 0x630   : > { %2582 = shalt.err (!%p2579_p12)
}
 0x631   : > { %s2679_s16 = smov 128  }
 0x632   : > { %2183 = dma.vmem_to_hbm [thread:$0]  (%p3298_p0), %s3174_s5, 256, %s3179_s24, %s1755_s3, %s2679_s16, %s2679_s16, %s2675_s0  }
 0x633 PF: > { %s1785_s28 = sand.u32 1, %s2637_s17   ;;  %p3299_p2 = scmp.ne.s32.totalorder %s3277_s2, 0 }
 0x634   : > { %p3300_p10 = scmp.ge.s32.totalorder %s2657_s22, 2  ;;  %s1786_s20 = scalar_lea.sflag [#allocation8], %s1785_s28 }
 0x636   : > { %p2212_p1 = pnand %p3300_p10, %p3299_p2 }
 0x638   : > { %2632 = dma.done.wait (!%p2212_p1), %s1786_s20, 256  }
 0x639   : > { %2634 = vsyncadd (!%p2212_p1), %s1786_s20, 4294967040  ;;  %s33_s22 = sadd.s32 1, %s2657_s22   ;;  %s3301_s17 = smov %s2641_s18 }
 0x63a   : > { %p30_p5 = scmp.ge.s32.totalorder %s33_s22, 4   ;;  %s3302_s18 = smov %s2645_s19 }
 0x63b   : > { %s3303_s19 = smov %s2958_s29  ;;  %s3304_s20 = smov %s2653_s21 }
 0x63c   : > { %s3305_s21 = smov %s3307_s30  ;;  %32 = sbr.rel (!%p30_p5) target bundleno = 22 (0x16), region = 149 }
 0x643   :  { %1791 = vsyncpa [#allocation7], 1 }
 0x644   :  { %1793 = vsyncpa [#allocation7 + $0x1], 1 }
 0x645   :  { %1794 = vsyncpa [#allocation10], 1 }
 0x646   :  { %1796 = vsyncpa [#allocation10 + $0x1], 1 }
 0x647   :  { %1797 = vsyncpa [#allocation13], 1 }
 0x648   :  { %1798 = vsyncpa [#allocation16], 1 }
 0x649   :  { %1799 = vsyncpa [#allocation19], 1 }
 0x64a   :  { %1800 = vsyncpa [#allocation8], 1 }
 0x64b   :  { %1802 = vsyncpa [#allocation8 + $0x1], 1 }

// kernel: tpu_custom_call.1
= control target key start
LH: loop header
LB: loop body
LE: loop exit
PB: predicated region body
PF: predicated region fallthrough
CT: control target
= control target key end

     0   :  { %s3231_s0 = inlined_call_operand.hbm [shape: f32[2,16,32], index: 0, kind: input, shape index: {}]   ;;  %s3232_s1 = inlined_call_operand.hbm [shape: f32[2,8,24], index: 1, kind: input, shape index: {}]   ;;  %s3233_s2 = inlined_call_operand.vmem [shape: f32[2,1,8], index: 2, kind: input, shape index: {}]   ;;  %s3234_s3 = inlined_call_operand.hbm [shape: f32[32,32], index: 3, kind: input, shape index: {}]   ;;  %s3235_s4 = inlined_call_operand.hbm [shape: f32[1,32], index: 4, kind: input, shape index: {}]   ;;  %s3236_s5 = inlined_call_operand.hbm [shape: f32[24,32], index: 5, kind: input, shape index: {}]   ;;  %s3237_s6 = inlined_call_operand.hbm [shape: f32[1,32], index: 6, kind: input, shape index: {}]   ;;  %s3238_s7 = inlined_call_operand.hbm [shape: f32[24,32], index: 7, kind: input, shape index: {}]   ;;  %s3239_s8 = inlined_call_operand.hbm [shape: f32[1,32], index: 8, kind: input, shape index: {}]   ;;  %s3240_s9 = inlined_call_operand.vmem [shape: f32[32,32], index: 9, kind: input, shape index: {}]   ;;  %s3241_s10 = inlined_call_operand.vmem [shape: f32[1,32], index: 10, kind: input, shape index: {}]   ;;  %s3242_s11 = inlined_call_operand.hbm [shape: f32[2,16,32], index: 11, kind: output, shape index: {}]  }
   0x1   :  { %3253 = sst [smem:[#allocation29_spill]] %s3231_s0 }
   0x2   :  { %3254 = sst [smem:[#allocation30_spill]] %s3233_s2 }
   0x3   :  { %3255 = sst [smem:[#allocation31_spill]] %s3234_s3 }
   0x4   :  { %3256 = sst [smem:[#allocation32_spill]] %s3235_s4 }
   0x5   :  { %3257 = sst [smem:[#allocation33_spill]] %s3236_s5 }
   0x6   :  { %3258 = sst [smem:[#allocation34_spill]] %s3237_s6 }
   0x7   :  { %3259 = sst [smem:[#allocation35_spill]] %s3238_s7 }
   0x8   :  { %3260 = sst [smem:[#allocation36_spill]] %s3240_s9 }
   0x9   :  { %3261 = sst [smem:[#allocation37_spill]] %s3241_s10 }
   0xa   :  { %3262 = sst [smem:[#allocation38_spill]] %s3242_s11 }
   0xb   :  { %16 = vsyncpa [#allocation7], 0 }
   0xc   :  { %18 = vsyncpa [#allocation7 + $0x1], 0 }
   0xd   :  { %19 = vsyncpa [#allocation10], 0 }
   0xe   :  { %21 = vsyncpa [#allocation10 + $0x1], 0 }
   0xf   :  { %22 = vsyncpa [#allocation13], 0 }
  0x10   :  { %23 = vsyncpa [#allocation16], 0 }
  0x11   :  { %24 = vsyncpa [#allocation19], 0 }
  0x12   :  { %25 = vsyncpa [#allocation8], 0 }
  0x13   :  { %27 = vsyncpa [#allocation8 + $0x1], 0  ;;  %s2740_s17 = smov 0   ;;  %s2742_s18 = smov 0  }
  0x14   :  { %s2744_s19 = smov 0   ;;  %s2746_s20 = smov 0  }
  0x15   :  { %s2748_s21 = smov 0   ;;  %s2750_s22 = smov 0  }
  0x16 LB: > { %3263 = sst [smem:[#allocation28_spill]] %s2649_s20  ;;  %s2771_s23 = sadd.s32 4294967295, %s2657_s22   ;;  %s2657_s22 = sphi %s2750_s22, %s33_s22   ;;  %s2653_s21 = sphi %s2748_s21, %s3305_s21   ;;  %s2649_s20 = sphi %s2746_s20, %s3304_s20   ;;  %s2645_s19 = sphi %s2744_s19, %s3303_s19   ;;  %s2641_s18 = sphi %s2742_s18, %s3302_s18   ;;  %s2637_s17 = sphi %s2740_s17, %s3301_s17  }
  0x17   : > { %p1948_p0 = scmp.ge.s32.totalorder %s2657_s22, 1  ;;  %p3246_p1 = scmp.eq.s32.totalorder %s2771_s23, 0 }
  0x18   : > { %p326_p2 = scmp.lt.s32.totalorder %s2657_s22, 3  ;;  %s2659_s25 = smov [#allocation11]  }
  0x19   : > { %s338_s26 = sshll.u32 %s2659_s25, 4  ;;  %s2660_s28 = smov [#allocation12]   ;;  %s2780_s26 = int_to_ptr.vmem [resolvable:$true] %s338_s26 }
  0x1a   : > { %p2776_p3 = pnand %p1948_p0, %p326_p2  ;;  %s352_s29 = sshll.u32 %s2660_s28, 4  ;;  %s2791_s29 = int_to_ptr.vmem [resolvable:$true] %s352_s29 }
  0x1b   : > { %s2661_s30 = smov [#allocation15]   ;;  %s3266_s3 = sld [smem:[#allocation31_spill]] }
  0x1c   : > { %s3264_s24 = scalar_select %p2776_p3, 1, 0 }
  0x1d   : > { %p2185_p4 = pneg %p2776_p3  ;;  %s2793_s12 = sshll.u32 %s2661_s30, 4  ;;  %s377_s12 = int_to_ptr.vmem [resolvable:$true] %s2793_s12 }
  0x1f   : > { %p2787_p6 = pnand %p2185_p4, %p3246_p1 }
  0x21   : > { %s2327_s15 = scalar_lea.hbm %s3266_s3, 512  ;;  %p2803_p8 = pneg %p2787_p6 }
  0x22   : > { %p2328_p7 = scmp.ne.s32.totalorder %s3266_s3, %s2327_s15  ;;  %p2334_p11 = scmp.lt.u32.totalorder %s2327_s15, %s3266_s3 }
  0x24   : > { %p2330_p9 = pnand %p2803_p8, %p2328_p7 }
  0x26   : > { %p2331_p10 = pneg %p2330_p9 }
  0x28   : > { %p2336_p12 = pnand %p2334_p11, %p2331_p10 }
  0x2a   : > { %2339 = shalt.err (!%p2336_p12)
}
  0x2b   : > { %s2340_s13 = scalar_lea.vmem %s2780_s26, 512  ;;  %p2348_p4 = scmp.lt.s32.totalorder %s2780_s26, %s2780_s26 }
  0x2c   : > { %p2341_p13 = scmp.ne.s32.totalorder %s2780_s26, %s2340_s13  ;;  %p2349_p5 = scmp.lt.s32.totalorder %s2340_s13, %s2340_s13 }
  0x2e   : > { %p2343_p0 = pnand %p2341_p13, %p2803_p8  ;;  %p2350_p7 = por %p2349_p5, %p2348_p4 }
  0x30   : > { %p2344_p2 = pneg %p2343_p0 }
  0x32   : > { %p2351_p9 = pnand %p2350_p7, %p2344_p2 }
  0x34   : > { %2354 = shalt.err (!%p2351_p9)
}
  0x35   : > { %s3248_s14 = smov 128   ;;  %s3250_s15 = smov 8  }
  0x36   : > { %2188 = dma.hbm_to_vmem [thread:$0]  (!%p2787_p6), %s3266_s3, 512, %s2780_s26, [#allocation10], %s3248_s14, %s3248_s14, %s3250_s15  }
  0x37   : > { %s3268_s4 = sld [smem:[#allocation32_spill]] }
  0x3d   : > { %s2355_s13 = scalar_lea.hbm %s3268_s4, 16 }
  0x3e   : > { %p2356_p5 = scmp.ne.s32.totalorder %s3268_s4, %s2355_s13  ;;  %p2362_p12 = scmp.lt.u32.totalorder %s2355_s13, %s3268_s4 }
  0x40   : > { %p2358_p10 = pnand %p2356_p5, %p2803_p8 }
  0x42   : > { %p2359_p11 = pneg %p2358_p10 }
  0x44   : > { %p2364_p13 = pnand %p2362_p12, %p2359_p11 }
  0x46   : > { %2367 = shalt.err (!%p2364_p13)
}
  0x47   : > { %s2368_s26 = scalar_lea.vmem %s2791_s29, 16  ;;  %s2375_s9 = scalar_lea.vmem %s2791_s29, 32 }
  0x48   : > { %p2369_p0 = scmp.ne.s32.totalorder %s2791_s29, %s2368_s26  ;;  %p2376_p7 = scmp.lt.s32.totalorder %s2791_s29, %s2791_s29 }
  0x49   : > { %p2377_p9 = scmp.lt.s32.totalorder %s2375_s9, %s2368_s26 }
  0x4a   : > { %p2371_p2 = pnand %p2369_p0, %p2803_p8 }
  0x4b   : > { %p2378_p5 = por %p2377_p9, %p2376_p7 }
  0x4c   : > { %p2372_p4 = pneg %p2371_p2 }
  0x4e   : > { %p2379_p10 = pnand %p2378_p5, %p2372_p4 }
  0x50   : > { %2382 = shalt.err (!%p2379_p10)
}
  0x51   : > { %2191 = dma.hbm_to_vmem [thread:$0]  (!%p2787_p6), %s3268_s4, 16, %s2791_s29, [#allocation13]  }
  0x52   : > { %s3269_s6 = sld [smem:[#allocation34_spill]] }
  0x58   : > { %s2383_s25 = scalar_lea.hbm %s3269_s6, 16 }
  0x59   : > { %p2384_p11 = scmp.ne.s32.totalorder %s3269_s6, %s2383_s25  ;;  %p2390_p0 = scmp.lt.u32.totalorder %s2383_s25, %s3269_s6 }
  0x5b   : > { %p2386_p12 = pnand %p2384_p11, %p2803_p8 }
  0x5d   : > { %p2387_p13 = pneg %p2386_p12 }
  0x5f   : > { %p2392_p2 = pnand %p2390_p0, %p2387_p13 }
  0x61   : > { %2395 = shalt.err (!%p2392_p2)
}
  0x62   : > { %s2396_s9 = scalar_lea.vmem %s377_s12, 16  ;;  %s2403_s29 = scalar_lea.vmem %s377_s12, 32 }
  0x63   : > { %p2397_p4 = scmp.ne.s32.totalorder %s377_s12, %s2396_s9  ;;  %p2404_p5 = scmp.lt.s32.totalorder %s377_s12, %s377_s12 }
  0x64   : > { %p2405_p10 = scmp.lt.s32.totalorder %s2403_s29, %s2396_s9 }
  0x65   : > { %p2399_p7 = pnand %p2397_p4, %p2803_p8 }
  0x66   : > { %p2406_p1 = por %p2405_p10, %p2404_p5 }
  0x67   : > { %p2400_p9 = pneg %p2399_p7 }
  0x69   : > { %p2407_p3 = pnand %p2406_p1, %p2400_p9 }
  0x6b   : > { %2410 = shalt.err (!%p2407_p3)
}
  0x6c   : > { %2197 = dma.hbm_to_vmem [thread:$0]  (!%p2787_p6), %s3269_s6, 16, %s377_s12, [#allocation16]  }
  0x6d   : > { %s2664_s20 = smov [#allocation14]   ;;  %s2665_s25 = smov [#allocation17]  }
  0x6e   : > { %s362_s16 = sshll.u32 %s2664_s20, 4  ;;  %s386_s28 = sshll.u32 %s2665_s25, 4  ;;  %s363_s16 = int_to_ptr.vmem [resolvable:$true] %s362_s16  ;;  %s387_s28 = int_to_ptr.vmem [resolvable:$true] %s386_s28 }
  0x6f   : > { %s3270_s5 = sld [smem:[#allocation33_spill]] }
  0x75   : > { %s2411_s26 = scalar_lea.hbm %s3270_s5, 384 }
  0x76   : > { %p2412_p1 = scmp.ne.s32.totalorder %s3270_s5, %s2411_s26  ;;  %p2418_p12 = scmp.lt.u32.totalorder %s2411_s26, %s3270_s5 }
  0x78   : > { %p2414_p3 = pnand %p2412_p1, %p2803_p8 }
  0x7a   : > { %p2415_p11 = pneg %p2414_p3 }
  0x7c   : > { %p2420_p13 = pnand %p2418_p12, %p2415_p11 }
  0x7e   : > { %2423 = shalt.err (!%p2420_p13)
}
  0x7f   : > { %s2424_s12 = scalar_lea.vmem %s363_s16, 384  ;;  %p2432_p7 = scmp.lt.s32.totalorder %s363_s16, %s363_s16 }
  0x80   : > { %p2425_p0 = scmp.ne.s32.totalorder %s363_s16, %s2424_s12  ;;  %p2433_p9 = scmp.lt.s32.totalorder %s2424_s12, %s2424_s12 }
  0x82   : > { %p2427_p2 = pnand %p2425_p0, %p2803_p8  ;;  %p2434_p5 = por %p2433_p9, %p2432_p7 }
  0x84   : > { %p2428_p4 = pneg %p2427_p2 }
  0x86   : > { %p2435_p10 = pnand %p2434_p5, %p2428_p4 }
  0x88   : > { %2438 = shalt.err (!%p2435_p10)
}
  0x89   : > { %s3271_s10 = smov 128   ;;  %s3272_s7 = sld [smem:[#allocation35_spill]] }
  0x8a   : > { %2194 = dma.hbm_to_vmem [thread:$0]  (!%p2787_p6), %s3270_s5, 384, %s363_s16, [#allocation13], %s3271_s10, %s3271_s10, %s3250_s15  }
  0x8f   : > { %s2439_s13 = scalar_lea.hbm %s3272_s7, 384 }
  0x90   : > { %p2440_p1 = scmp.ne.s32.totalorder %s3272_s7, %s2439_s13  ;;  %p2446_p12 = scmp.lt.u32.totalorder %s2439_s13, %s3272_s7 }
  0x92   : > { %p2442_p3 = pnand %p2440_p1, %p2803_p8 }
  0x94   : > { %p2443_p11 = pneg %p2442_p3 }
  0x96   : > { %p2448_p13 = pnand %p2446_p12, %p2443_p11 }
  0x98   : > { %2451 = shalt.err (!%p2448_p13)
}
  0x99   : > { %s2452_s12 = scalar_lea.vmem %s387_s28, 384  ;;  %p2460_p7 = scmp.lt.s32.totalorder %s387_s28, %s387_s28 }
  0x9a   : > { %p2453_p0 = scmp.ne.s32.totalorder %s387_s28, %s2452_s12  ;;  %p2461_p9 = scmp.lt.s32.totalorder %s2452_s12, %s2452_s12 }
  0x9c   : > { %p2455_p2 = pnand %p2453_p0, %p2803_p8  ;;  %p2462_p5 = por %p2461_p9, %p2460_p7 }
  0x9e   : > { %p2456_p4 = pneg %p2455_p2 }
  0xa0   : > { %p2463_p10 = pnand %p2462_p5, %p2456_p4 }
  0xa2   : > { %2466 = shalt.err (!%p2463_p10)
}
  0xa3   : > { %2200 = dma.hbm_to_vmem [thread:$0]  (!%p2787_p6), %s3272_s7, 384, %s387_s28, [#allocation16], %s3271_s10, %s3271_s10, %s3250_s15  }
  0xa4   : > { %s2666_s20 = smov [#allocation18]   ;;  %s2467_s26 = scalar_lea.hbm %s3239_s8, 16 }
  0xa5   : > { %s400_s25 = sshll.u32 %s2666_s20, 4  ;;  %p2468_p1 = scmp.ne.s32.totalorder %s3239_s8, %s2467_s26  ;;  %s401_s25 = int_to_ptr.vmem [resolvable:$true] %s400_s25 }
  0xa6   : > { %p2474_p12 = scmp.lt.u32.totalorder %s2467_s26, %s3239_s8 }
  0xa7   : > { %p2470_p3 = pnand %p2468_p1, %p2803_p8 }
  0xa9   : > { %p2471_p11 = pneg %p2470_p3 }
  0xab   : > { %p2476_p13 = pnand %p2474_p12, %p2471_p11 }
  0xad   : > { %2479 = shalt.err (!%p2476_p13)
}
  0xae   : > { %s2480_s28 = scalar_lea.vmem %s401_s25, 16  ;;  %s2487_s16 = scalar_lea.vmem %s401_s25, 32 }
  0xaf   : > { %p2481_p0 = scmp.ne.s32.totalorder %s401_s25, %s2480_s28  ;;  %p2488_p7 = scmp.lt.s32.totalorder %s401_s25, %s401_s25 }
  0xb0   : > { %p2489_p9 = scmp.lt.s32.totalorder %s2487_s16, %s2480_s28 }
  0xb1   : > { %p2483_p2 = pnand %p2481_p0, %p2803_p8 }
  0xb2   : > { %p2490_p5 = por %p2489_p9, %p2488_p7 }
  0xb3   : > { %p2484_p4 = pneg %p2483_p2 }
  0xb5   : > { %p2491_p10 = pnand %p2490_p5, %p2484_p4 }
  0xb7   : > { %2494 = shalt.err (!%p2491_p10)
}
  0xb8   : > { %2203 = dma.hbm_to_vmem [thread:$0]  (!%p2787_p6), %s3239_s8, 16, %s401_s25, [#allocation19]  }
  0xb9   : > { %s1947_s11 = sadd.s32 4294967294, %s2657_s22   ;;  %s45_s30 = sadd.s32 1, %s2653_s21 }
  0xba   : > { %p47_p8 = scmp.ge.s32.totalorder %s45_s30, 2  ;;  %s54_s27 = sadd.s32 1, %s2645_s19 }
  0xbb   : > { %p61_p1 = scmp.ne.s32.totalorder %s2645_s19, %s2641_s18  ;;  %p62_p3 = scmp.eq.s32.totalorder %s2657_s22, 0 }
  0xbc   : > { %s3307_s30 = smov (%p47_p8, %s45_s30), 0  ;;  %p67_p12 = scmp.ne.s32.totalorder %s2641_s18, %s2637_s17 }
  0xbd   : > { %p2938_p11 = por %p62_p3, %p61_p1  ;;  %s49_s25 = ssub.s32 %s2653_s21, %s3307_s30 }
  0xbe   : > { %p313_p6 = scmp.eq.s32.totalorder %s2771_s23, 1  ;;  %p52_p13 = scmp.eq.s32.totalorder %s49_s25, 0 }
  0xbf   : > { %p3274_p0 = scmp.eq.s32.totalorder %s2771_s23, 0  ;;  %p319_p7 = scmp.eq.s32.totalorder %s1947_s11, 1 }
  0xc0   : > { %p2953_p4 = por %p313_p6, %p61_p1  ;;  %p2221_p5 = scmp.lt.s32.totalorder %s2657_s22, 2 }
  0xc1   : > { %p2949_p2 = por %p3274_p0, %p67_p12  ;;  %p2960_p9 = por %p319_p7, %p67_p12 }
  0xc2   : > { %s3276_s9 = scalar_select %p2953_p4, 1, 0 }
  0xc3   : > { %s3275_s26 = scalar_select %p2949_p2, 1, 0 }
  0xc4   : > { %s2958_s29 = scalar_select %p52_p13, %s2645_s19, %s54_s27  }
  0xc5   : > { %s3277_s2 = scalar_select %p2960_p9, 1, 0 }
  0xc6   : > { %s2966_s12 = sand.u32 1, %s2645_s19   ;;  %s2007_s28 = sshll.u32 %s2653_s21, 8 }
  0xc7   : > { %s1956_s16 = sshll.u32 %s2966_s12, 4  ;;  %s3278_s0 = sld [smem:[#allocation29_spill]] }
  0xc8   : > { %s421_s11 = scalar_lea.vmem [#allocation6], %s1956_s16  ;;  %p2977_p10 = pnand %p2221_p5, %p2938_p11 }
  0xc9   : > { %s430_s27 = sshll.u32 %s421_s11, 4  ;;  %s418_s4 = scalar_lea.sflag [#allocation7], %s2966_s12  ;;  %s2981_s27 = int_to_ptr.vmem [resolvable:$true] %s430_s27 }
  0xca   : > { %p2497_p1 = pneg %p2977_p10 }
  0xcd   : > { %s2973_s25 = scalar_lea.hbm %s3278_s0, %s2007_s28  ;;  %s2500_s16 = scalar_lea.hbm %s3278_s0, 512 }
  0xce   : > { %s2495_s14 = scalar_lea.hbm %s2973_s25, 256  ;;  %p2501_p11 = scmp.lt.u32.totalorder %s2973_s25, %s3278_s0 }
  0xcf   : > { %p2496_p8 = scmp.ne.s32.totalorder %s2973_s25, %s2495_s14  ;;  %p2502_p6 = scmp.lt.u32.totalorder %s2500_s16, %s2495_s14 }
  0xd0   : > { %p2504_p0 = scmp.lt.u32.totalorder %s2495_s14, %s2973_s25 }
  0xd1   : > { %p2498_p3 = pnand %p2497_p1, %p2496_p8  ;;  %p2503_p13 = por %p2502_p6, %p2501_p11 }
  0xd3   : > { %p2499_p12 = pneg %p2498_p3  ;;  %p2505_p7 = por %p2504_p0, %p2503_p13 }
  0xd5   : > { %p2506_p5 = pnand %p2505_p7, %p2499_p12 }
  0xd7   : > { %2509 = shalt.err (!%p2506_p5)
}
  0xd8   : > { %s2510_s3 = scalar_lea.vmem %s2981_s27, 256  ;;  %s2667_s28 = smov [#allocation6]  }
  0xd9   : > { %p2511_p8 = scmp.ne.s32.totalorder %s2981_s27, %s2510_s3  ;;  %s2515_s13 = sshll.u32 %s2667_s28, 4  ;;  %s2516_s13 = int_to_ptr.vmem [resolvable:$false] %s2515_s13 }
  0xda   : > { %s2517_s20 = scalar_lea.vmem %s2516_s13, 512  ;;  %p2518_p4 = scmp.lt.s32.totalorder %s2981_s27, %s2516_s13 }
  0xdb   : > { %p2513_p3 = pnand %p2511_p8, %p2497_p1  ;;  %p2519_p11 = scmp.lt.s32.totalorder %s2517_s20, %s2510_s3 }
  0xdd   : > { %p2514_p9 = pneg %p2513_p3  ;;  %p2520_p6 = por %p2519_p11, %p2518_p4 }
  0xdf   : > { %p2521_p13 = pnand %p2520_p6, %p2514_p9 }
  0xe1   : > { %2524 = shalt.err (!%p2521_p13)
}
  0xe2   : > { %s3280_s14 = smov 8   ;;  %s1959_s16 = sshll.u32 %s2966_s12, 3 }
  0xe3   : > { %2207 = dma.hbm_to_vmem [thread:$0]  (!%p2977_p10), %s2973_s25, 256, %s2981_s27, %s418_s4, %s3271_s10, %s3271_s10, %s3280_s14  }
  0xe4   : > { %s1960_s11 = sshll.u32 %s2653_s21, 7  ;;  %s444_s20 = scalar_lea.vmem [#allocation9], %s1959_s16 }
  0xe5   : > { %s3020_s13 = scalar_lea.hbm %s3232_s1, %s1960_s11  ;;  %s451_s0 = sshll.u32 %s444_s20, 4  ;;  %s452_s0 = int_to_ptr.vmem [resolvable:$true] %s451_s0 }
  0xe6   : > { %s3281_s5 = sand.u32 1, %s2657_s22   ;;  %s2525_s7 = scalar_lea.hbm %s3020_s13, 128 }
  0xe7   : > { %s441_s6 = scalar_lea.sflag [#allocation10], %s3281_s5  ;;  %p2526_p4 = scmp.ne.s32.totalorder %s3020_s13, %s2525_s7 }
  0xe8   : > { %s2530_s12 = scalar_lea.hbm %s3232_s1, 256  ;;  %p2531_p0 = scmp.lt.u32.totalorder %s3020_s13, %s3232_s1 }
  0xe9   : > { %p2528_p9 = pnand %p2526_p4, %p2497_p1  ;;  %p2532_p7 = scmp.lt.u32.totalorder %s2530_s12, %s2525_s7 }
  0xea   : > { %p2534_p8 = scmp.lt.u32.totalorder %s2525_s7, %s3020_s13 }
  0xeb   : > { %p2529_p12 = pneg %p2528_p9  ;;  %p2533_p5 = por %p2532_p7, %p2531_p0 }
  0xed   : > { %p2535_p3 = por %p2534_p8, %p2533_p5 }
  0xef   : > { %p2536_p11 = pnand %p2535_p3, %p2529_p12 }
  0xf1   : > { %2539 = shalt.err (!%p2536_p11)
}
  0xf2   : > { %s2540_s5 = scalar_lea.vmem %s452_s0, 128  ;;  %s2668_s14 = smov [#allocation9]  }
  0xf3   : > { %p2541_p6 = scmp.ne.s32.totalorder %s452_s0, %s2540_s5  ;;  %s2545_s16 = sshll.u32 %s2668_s14, 4  ;;  %s2546_s16 = int_to_ptr.vmem [resolvable:$false] %s2545_s16 }
  0xf4   : > { %s2547_s11 = scalar_lea.vmem %s2546_s16, 256  ;;  %p2548_p9 = scmp.lt.s32.totalorder %s452_s0, %s2546_s16 }
  0xf5   : > { %p2543_p13 = pnand %p2541_p6, %p2497_p1  ;;  %p2549_p2 = scmp.lt.s32.totalorder %s2547_s11, %s2540_s5 }
  0xf7   : > { %p2544_p4 = pneg %p2543_p13  ;;  %p2550_p0 = por %p2549_p2, %p2548_p9 }
  0xf9   : > { %p2551_p7 = pnand %p2550_p0, %p2544_p4 }
  0xfb   : > { %2554 = shalt.err (!%p2551_p7)
}
  0xfc   : > { %2210 = dma.hbm_to_vmem [thread:$0]  (!%p2977_p10), %s3020_s13, 128, %s452_s0, %s441_s6  }
  0xfd   : > { %p3282_p12 = scmp.ne.s32.totalorder %s3264_s24, 0 }
  0xfe   : > { %s3046_s7 = sand.u32 (!%p3282_p12), 1, %s2641_s18   ;;  %p3283_p2 = scmp.ne.s32.totalorder (!%p3282_p12), %s3275_s26, 0 }
  0xff   : > { %466 = sbr.rel (%p3282_p12) target bundleno = 1587 (0x633), region = 64  ;;  %s1962_s3 = sshll.u32 (!%p3282_p12), %s3046_s7, 4 }
 0x100   : > { %s469_s28 = scalar_lea.sflag (!%p3282_p12), [#allocation7], %s3046_s7  ;;  %s3052_s20 = scalar_lea.vmem (!%p3282_p12), [#allocation6], %s1962_s3 }
 0x106   : > { %2608 = dma.done.wait (%p3283_p2), %s469_s28, 256  }
 0x107   : > { %2610 = vsyncadd (%p3283_p2), %s469_s28, 4294967040  ;;  %s477_s0 = sand.u32 1, %s2771_s23   ;;  %s1963_s6 = sshll.u32 %s3046_s7, 3 }
 0x108   : > { %s478_s24 = scalar_lea.sflag [#allocation10], %s477_s0  ;;  %s3060_s15 = scalar_lea.vmem [#allocation9], %s1963_s6 }
 0x109   : > { %2612 = dma.done.wait (%p3283_p2), %s478_s24, 128  }
 0x10a   : > { %2614 = vsyncadd (%p3283_p2), %s478_s24, 4294967168  ;;  %p3284_p10 = scmp.eq.s32.totalorder %s2771_s23, 0 }
 0x10c   : > { %2616 = dma.done.wait (%p3284_p10), [#allocation10], 512   ;;  %p3285_p1 = pmov %p3284_p10 }
 0x10e   : > { %2618 = vsyncadd (%p3285_p1), [#allocation10], 4294966784  ;;  %p3286_p5 = pmov %p3285_p1 }
 0x10f   : > { %p3287_p8 = pmov %p3285_p1 }
 0x110   : > { %2620 = dma.done.wait (%p3286_p5), [#allocation13], 400  }
 0x111   : > { %2622 = vsyncadd (%p3287_p8), [#allocation13], 4294966896  ;;  %p3288_p3 = pmov %p3285_p1 }
 0x112   : > { %p3289_p11 = pmov %p3285_p1 }
 0x113   : > { %2624 = dma.done.wait (%p3288_p3), [#allocation16], 400  }
 0x114   : > { %2626 = vsyncadd (%p3289_p11), [#allocation16], 4294966896  ;;  %p3290_p6 = pmov %p3285_p1 }
 0x115   : > { %p3291_p13 = pmov %p3285_p1 }
 0x116   : > { %2628 = dma.done.wait (%p3290_p6), [#allocation19], 16  }
 0x117   : > { %2630 = vsyncadd (%p3291_p13), [#allocation19], 4294967280  ;;  %v2669_v0 = vmov 0.0|0.0   ;;  %vm2670_vm0 = vmmov 0   ;;  %v2671_v1 = vmov 0.0   ;;  %v560_v2 = vld [vmem:[#allocation11] sm:$0xff] }
 0x118   : > { %2141 = vmatprep.subr.bf16.mxu1 %v2669_v0  ;;  %2070 = vmatprep.mubr.msk.f32.mxu1 %vm2670_vm0, %v2671_v1  ;;  %v561_v3 = vld [vmem:[#allocation11 + $0x8] sm:$0xff]  ;;  %vm571_vm1 = vcmask 261120   ;;  %v562_v7 = vld [vmem:[#allocation11 + $0x10] sm:$0xff]  ;;  %v563_v8 = vld [vmem:[#allocation11 + $0x18] sm:$0xff]  ;;  %vm663_vm2 = vcmask 195584   ;;  %vm832_vm3 = vcmask 64512  }
 0x119   : > { %v653_v4 = vld [vmem:[#allocation14] sm:$0xff]  ;;  %v2133_v5 = vpack.c.bf16 %v561_v3, %v560_v2  ;;  %v654_v6 = vld [vmem:[#allocation14 + $0x8] sm:$0xff]  ;;  %v2137_v10 = vpack.c.bf16 %v563_v8, %v562_v7  ;;  %v655_v12 = vld [vmem:[#allocation14 + $0x10] sm:$0xff]  ;;  %s2672_s23 = smov 112   ;;  %s2673_s26 = smov 120   ;;  %vm1231_vm4 = vcmask 130112  }
 0x11a   : > { %v2142_v9 = vpack.c.bf16 %v654_v6, %v653_v4  ;;  %v557_v11 = vld [vmem:[%s3052_s20] sm:$0xff]  ;;  %v558_v14 = vld [vmem:[%s3052_s20 + $0x8] sm:$0xff]  ;;  %s2674_s13 = smov 104   ;;  %s3292_s4 = sld [smem:[#allocation28_spill]]  ;;  %vm1443_vm5 = vcmask 195712   ;;  %vm1655_vm6 = vcmask 261312  }
 0x11b   : > { %2134 = vmatprep.subr.bf16.mxu0 %v2133_v5  ;;  %2061 = vmatprep.mubr.msk.f32.mxu0 %vm571_vm1, %v557_v11  ;;  %v559_v13 = vld [vmem:[%s3060_s15] sm:$0xff]  ;;  %v738_v16 = vld [vmem:[#allocation17 + $0x8] sm:$0xff]  ;;  %v1971_v21 = vld [vmem:[#allocation12] ss:$0 sm:$0xff]  ;;  %s3293_s27 = sld [smem:[#allocation30_spill]]  ;;  %s3294_s11 = sld [smem:[#allocation36_spill]] }
 0x11c   : > { %2143 = vmatpush3.bf16.msra.mxu1 %v2142_v9  ;;  %2136 = vmatpush3.bf16.msra.mxu0 %v2133_v5  ;;  %v737_v15 = vld [vmem:[#allocation17] sm:$0xff]  ;;  %v739_v18 = vld [vmem:[#allocation17 + $0x10] sm:$0xff]  ;;  %v1974_v19 = vld [vmem:[#allocation15] ss:$0 sm:$0xff]  ;;  %s2675_s0 = smov 8   ;;  %s3295_s25 = sld [smem:[#allocation37_spill]] }
 0x11d   : > { %2068 = vmatprep.subr.mxu1 %v2671_v1  ;;  %2138 = vmatprep.subr.bf16.mxu0 %v2137_v10  ;;  %v2145_v17 = vpack.c.bf16 %v738_v16, %v737_v15  ;;  %v1976_v31 = vld [vmem:[#allocation18] ss:$0 sm:$0xff]  ;;  %s3296_s20 = sld [smem:[#allocation38_spill]]  ;;  %p3298_p0 = scmp.ne.s32.totalorder %s3276_s9, 0 }
 0x11e   : > { %s2678_s15 = smov [#allocation20]  }
 0x120   : > { %2069 = vmatpush3.msra.mxu1 %v655_v12  ;;  %2140 = vmatpush3.bf16.msra.mxu0 %v2137_v10  ;;  %p553_p4 = scmp.lt.s32.totalorder %s3292_s4, 1  ;;  %s2008_s14 = sshll.u32 %s3292_s4, 8 }
 0x121   : > { %2071 = vmatmul.mubr.msk.f32.vlgmr.msra.gmra.mrb[0].mxu1 %vm663_vm2, %v559_v13  ;;  %2144 = vmatprep.subr.bf16.mxu1 %v2669_v0 }
 0x122   : > { %2079 = vmatprep.mubr.msk.f32.mxu1 %vm2670_vm0, %v2671_v1  ;;  %2146 = vmatpush3.bf16.msra.mxu1 %v2145_v17  ;;  %s554_s10 = scalar_select %p553_p4, %s3292_s4, 1 }
 0x123   : > { %2062 = vmatmul.mubr.msk.f32.vlgmr.msra.gmra.mrb[0].mxu0 %vm571_vm1, %v558_v14  ;;  %2077 = vmatprep.subr.mxu1 %v2671_v1  ;;  %s3297_s6 = smov %s3296_s20  ;;  %s3179_s24 = scalar_lea.hbm %s3296_s20, %s2008_s14 }
 0x124   : > { %s555_s5 = scalar_lea.vmem %s3293_s27, %s554_s10  ;;  %s551_s27 = scalar_lea.vmem [#allocation20], %s1962_s3 }
 0x125   : > { %v1978_v45 = vld [vmem:[%s555_s5] ss:$0 sm:$0xff]  ;;  %s1770_s5 = sshll.u32 %s551_s27, 4  ;;  %s1755_s3 = scalar_lea.sflag [#allocation8], %s3046_s7  ;;  %s3174_s5 = int_to_ptr.vmem [resolvable:$true] %s1770_s5 }
 0x126   : > { %2078 = vmatpush3.msra.mxu1 %v739_v18  ;;  %s2555_s4 = scalar_lea.vmem %s3174_s5, 256 }
 0x127   : > { %2080 = vmatmul.mubr.msk.f32.vlgmr.msra.gmra.mrb[2].mxu1 %vm663_vm2, %v559_v13  ;;  %p2556_p9 = scmp.ne.s32.totalorder %s3174_s5, %s2555_s4 }
 0x129   : > { %p2557_p7 = pnand %p2556_p9, %p3298_p0 }
 0x12b   : > { %p2558_p12 = pneg %p2557_p7 }
 0x1f4   : > { %v733_v20 = vpop.f32.mrb[0].mxu1 }
 0x1f5   : > { %v734_v22 = vadd.f32 %v1974_v19, %v733_v20  ;;  %v2072_v23 = vpop.f32.mrb[1].mxu1 }
 0x1f6   : > { %v2063_v24 = vpop.f32.mrb[0].mxu0 }
 0x1f7   : > { %819 = vst.msk [vmem:[#allocation3] sm:$0xff] %vm571_vm1, %v734_v22  ;;  %v650_v25 = vadd.f32 %v2063_v24, %v1971_v21  ;;  %v644_v26 = vpop.f32.mrb[1].mxu0 }
 0x1f8   : > { %v645_v27 = vadd.f32 %v1971_v21, %v644_v26 }
 0x1f9   : > { %818 = vst.msk [vmem:[#allocation2 + $0x8] sm:$0xff] %vm571_vm1, %v650_v25 }
 0x1fa   : > { %817 = vst.msk [vmem:[#allocation2] sm:$0xff] %vm571_vm1, %v645_v27  ;;  %v813_v32 = vpop.f32.mrb[2].mxu1 }
 0x1fb   : > { %v814_v33 = vadd.f32 %v1976_v31, %v813_v32  ;;  %v2081_v34 = vpop.f32.mrb[3].mxu1 }
 0x1fd   : > { %820 = vst.msk [vmem:[#allocation4] sm:$0xff] %vm571_vm1, %v814_v33 }
 0x1fe   : > { %v1236_v28 = vld [vmem:[#allocation3] sm:$0xff] }
 0x1ff   : > { %1245 = vrot.lane.b32.xlu1 %v1236_v28, %s2672_s23  ;;  %1033 = vrot.lane.b32.xlu0 %v1236_v28, %s2673_s26 }
 0x200   : > { %2082 = vmatprep.subr.msk.mxu0 %vm832_vm3, %v1236_v28  ;;  %v1023_v29 = vld [vmem:[#allocation2 + $0x8] sm:$0xff] }
 0x201   : > { %2083 = vmatpush3.xpose.msk.msra.mxu0 %vm832_vm3, %v1236_v28  ;;  %v1022_v30 = vld [vmem:[#allocation2] sm:$0xff] }
 0x202   : > { %2084 = vmatprep.mubr.msk.f32.mxu0 %vm832_vm3, %v1022_v30 }
 0x203   : > { %1030 = vrot.lane.b32.xlu1 %v1023_v29, %s2673_s26  ;;  %1028 = vrot.lane.b32.xlu0 %v1022_v30, %s2673_s26 }
 0x204   : > { %2085 = vmatmul.mubr.msk.f32.vlgmr.msra.gmra.mrb[2].mxu0 %vm832_vm3, %v1023_v29  ;;  %v825_v44 = vld [vmem:[#allocation4] sm:$0xff] }
 0x205   : > { %2087 = vmatprep.subr.mxu0 %v825_v44 }
 0x206   : > { %2088 = vmatpush3.msra.mxu0 %v825_v44 }
 0x207   : > { %1242 = vrot.lane.b32.xlu1 %v1023_v29, %s2672_s23  ;;  %1240 = vrot.lane.b32.xlu0 %v1022_v30, %s2672_s23 }
 0x20b   : > { %1452 = vrot.lane.b32.xlu1 %v1022_v30, %s2674_s13  ;;  %1457 = vrot.lane.b32.xlu0 %v1236_v28, %s2674_s13 }
 0x20f   : > { %1454 = vrot.lane.b32.xlu0 %v1023_v29, %s2674_s13 }
 0x271   : > { %v1246_v35 = vpop.permute.xlu1 %1245  ;;  %v1034_v36 = vpop.permute.xlu0 %1033 }
 0x272   : > { %2092 = vmatprep.subr.msk.mxu1 %vm832_vm3, %v1034_v36 }
 0x273   : > { %2093 = vmatpush3.xpose.msk.msra.mxu1 %vm832_vm3, %v1034_v36 }
 0x274   : > { %2102 = vmatprep.subr.msk.mxu1 %vm832_vm3, %v1246_v35 }
 0x275   : > { %v1031_v37 = vpop.permute.xlu1 %1030  ;;  %v1029_v38 = vpop.permute.xlu0 %1028 }
 0x276   : > { %2094 = vmatprep.mubr.msk.f32.mxu1 %vm832_vm3, %v1029_v38 }
 0x277   : > { %2095 = vmatmul.mubr.msk.f32.vlgmr.msra.gmra.mrb[4].mxu1 %vm832_vm3, %v1031_v37 }
 0x278   : > { %2103 = vmatpush3.xpose.msk.msra.mxu1 %vm832_vm3, %v1246_v35 }
 0x279   : > { %v1243_v39 = vpop.permute.xlu1 %1242  ;;  %v1241_v40 = vpop.permute.xlu0 %1240 }
 0x27a   : > { %2104 = vmatprep.mubr.msk.f32.mxu1 %vm832_vm3, %v1241_v40 }
 0x27b   : > { %2105 = vmatmul.mubr.msk.f32.vlgmr.msra.gmra.mrb[6].mxu1 %vm832_vm3, %v1243_v39 }
 0x27d   : > { %v1453_v41 = vpop.permute.xlu1 %1452  ;;  %v1458_v42 = vpop.permute.xlu0 %1457 }
 0x27e   : > { %2112 = vmatprep.subr.msk.mxu1 %vm832_vm3, %v1458_v42  ;;  %2114 = vmatprep.mubr.msk.f32.mxu1 %vm832_vm3, %v1453_v41 }
 0x27f   : > { %2113 = vmatpush3.xpose.msk.msra.mxu1 %vm832_vm3, %v1458_v42 }
 0x281   : > { %v1455_v43 = vpop.permute.xlu0 %1454 }
 0x282   : > { %2115 = vmatmul.mubr.msk.f32.vlgmr.msra.gmra.mrb[8].mxu1 %vm832_vm3, %v1455_v43 }
 0x2d7   : > { %v2086_v46 = vpop.f32.mrb[2].mxu0 }
 0x2d8   : > { %v914_v47 = vadd.f32 %v2086_v46, %v1978_v45  ;;  %v908_v48 = vpop.f32.mrb[3].mxu0 }
 0x2d9   : > { %v909_v49 = vadd.f32 %v1978_v45, %v908_v48 }
 0x2da   : > { %v920_v50 = vsel %vm832_vm3, %v914_v47, -inf }
 0x2db   : > { %921 = vmax.xlane.f32.xlu0 %v920_v50  ;;  %v917_v51 = vsel %vm832_vm3, %v909_v49, -inf }
 0x2dc   : > { %918 = vmax.xlane.f32.xlu1 %v917_v51 }
 0x34a   : > { %v2096_v52 = vpop.f32.mrb[4].mxu1 }
 0x34b   : > { %v1113_v53 = vadd.f32 %v2096_v52, %v1978_v45  ;;  %v1107_v54 = vpop.f32.mrb[5].mxu1 }
 0x34c   : > { %v1108_v55 = vadd.f32 %v1978_v45, %v1107_v54 }
 0x34d   : > { %v1119_v56 = vsel %vm832_vm3, %v1113_v53, -inf }
 0x34e   : > { %v2106_v57 = vpop.f32.mrb[6].mxu1  ;;  %1120 = vmax.xlane.f32.xlu1 %v1119_v56  ;;  %v1116_v58 = vsel %vm832_vm3, %v1108_v55, -inf }
 0x34f   : > { %v1325_v59 = vadd.f32 %v2106_v57, %v1978_v45  ;;  %v1319_v60 = vpop.f32.mrb[7].mxu1  ;;  %1117 = vmax.xlane.f32.xlu0 %v1116_v58 }
 0x350   : > { %v1320_v61 = vadd.f32 %v1978_v45, %v1319_v60 }
 0x351   : > { %v1331_v62 = vsel %vm832_vm3, %v1325_v59, -inf }
 0x352   : > { %1332 = vmax.xlane.f32.xlu1 %v1331_v62  ;;  %v1328_v63 = vsel %vm832_vm3, %v1320_v61, -inf }
 0x353   : > { %1329 = vmax.xlane.f32.xlu0 %v1328_v63 }
 0x355   : > { %v2116_v0 = vpop.f32.mrb[8].mxu1 }
 0x356   : > { %v1537_v1 = vadd.f32 %v2116_v0, %v1978_v45  ;;  %v1531_v2 = vpop.f32.mrb[9].mxu1 }
 0x357   : > { %v1532_v3 = vadd.f32 %v1978_v45, %v1531_v2 }
 0x358   : > { %v1543_v4 = vsel %vm832_vm3, %v1537_v1, -inf }
 0x359   : > { %1544 = vmax.xlane.f32.xlu1 %v1543_v4  ;;  %v1540_v5 = vsel %vm832_vm3, %v1532_v3, -inf  ;;  %v1660_v4 = vld [vmem:[%s3294_s11] sm:$0xff] }
 0x35a   : > { %1541 = vmax.xlane.f32.xlu0 %v1540_v5  ;;  %v1661_v5 = vld [vmem:[%s3294_s11 + $0x8] sm:$0xff] }
 0x368   : > { %v922_v6 = vpop.xlane.xlu0 %921 }
 0x369   : > { %v924_v7 = vsub.f32 %v914_v47, %v922_v6  ;;  %v919_v8 = vpop.xlane.xlu1 %918 }
 0x36a   : > { %v923_v9 = vsub.f32 %v909_v49, %v919_v8  ;;  %1347 = vrot.lane.b32.xlu1 %v825_v44, %s2672_s23  ;;  %v1662_v8 = vld [vmem:[%s3294_s11 + $0x10] sm:$0xff]  ;;  %s2559_s23 = sshll.u32 %s2678_s15, 4  ;;  %s2560_s23 = int_to_ptr.vmem [resolvable:$false] %s2559_s23 }
 0x36b   : > { %v927_v10 = vmul.f32 1.442695, %v924_v7  ;;  %v2147_v7 = vpack.c.bf16 %v1661_v5, %v1660_v4  ;;  %p2562_p2 = scmp.lt.s32.totalorder %s3174_s5, %s2560_s23 }
 0x36c   : > { %v925_v11 = vmul.f32 1.442695, %v923_v9  ;;  %v1663_v9 = vld [vmem:[%s3294_s11 + $0x18] sm:$0xff] }
 0x36d   : > { %2148 = vmatprep.subr.bf16.mxu1 %v2147_v7 }
 0x36e   : > { %2295 = vpow2.f32 %v925_v11  ;;  %1559 = vrot.lane.b32.xlu1 %v825_v44, %s2674_s13  ;;  %2150 = vmatpush3.bf16.msra.mxu1 %v2147_v7  ;;  %s2677_s13 = smov 24  }
 0x36f   : > { %2297 = vpow2.f32 %v927_v10 }
 0x370   : > { %1135 = vrot.lane.b32.xlu0 %v825_v44, %s2673_s26  ;;  %s2676_s26 = smov 16  }
 0x378   : > { %v2296_v12 = vpop.eup %2295 }
 0x379   : > { %v2298_v13 = vpop.eup %2297  ;;  %2089 = vmatprep.mubr.msk.f32.mxu0 %vm832_vm3, %v2296_v12  ;;  %v929_v47 = vsel %vm832_vm3, %v2296_v12, 0.0  ;;  %v2151_v12 = vpack.c.bf16 %v1663_v9, %v1662_v8 }
 0x37a   : > { %2090 = vmatmul.mubr.msk.f32.vlgmr.msra.gmra.mrb[4].mxu0 %vm832_vm3, %v2298_v13  ;;  %v932_v48 = vsel %vm832_vm3, %v2298_v13, 0.0 }
 0x37b   : > { %2152 = vmatprep.subr.bf16.mxu1 %v2151_v12 }
 0x37c   : > { %2154 = vmatpush3.bf16.msra.mxu1 %v2151_v12 }
 0x3db   : > { %v1121_v14 = vpop.xlane.xlu1 %1120 }
 0x3dc   : > { %v1123_v15 = vsub.f32 %v1113_v53, %v1121_v14  ;;  %v1118_v16 = vpop.xlane.xlu0 %1117 }
 0x3dd   : > { %v1122_v17 = vsub.f32 %v1108_v55, %v1118_v16 }
 0x3de   : > { %v1126_v18 = vmul.f32 1.442695, %v1123_v15 }
 0x3df   : > { %v1124_v19 = vmul.f32 1.442695, %v1122_v17  ;;  %v1333_v20 = vpop.xlane.xlu1 %1332 }
 0x3e0   : > { %2299 = vpow2.f32 %v1126_v18  ;;  %v1335_v21 = vsub.f32 %v1325_v59, %v1333_v20  ;;  %v1330_v22 = vpop.xlane.xlu0 %1329 }
 0x3e1   : > { %2301 = vpow2.f32 %v1124_v19  ;;  %v1334_v23 = vsub.f32 %v1320_v61, %v1330_v22 }
 0x3e2   : > { %v1338_v24 = vmul.f32 1.442695, %v1335_v21 }
 0x3e3   : > { %v1336_v25 = vmul.f32 1.442695, %v1334_v23 }
 0x3e4   : > { %2303 = vpow2.f32 %v1338_v24 }
 0x3e5   : > { %2305 = vpow2.f32 %v1336_v25 }
 0x3e6   : > { %v1545_v26 = vpop.xlane.xlu1 %1544 }
 0x3e7   : > { %v1547_v27 = vsub.f32 %v1537_v1, %v1545_v26  ;;  %v1542_v28 = vpop.xlane.xlu0 %1541 }
 0x3e8   : > { %v1546_v29 = vsub.f32 %v1532_v3, %v1542_v28 }
 0x3e9   : > { %v1550_v30 = vmul.f32 1.442695, %v1547_v27 }
 0x3ea   : > { %v2300_v31 = vpop.eup %2299  ;;  %v1548_v32 = vmul.f32 1.442695, %v1546_v29  ;;  %v1348_v33 = vpop.permute.xlu1 %1347 }
 0x3eb   : > { %v2302_v34 = vpop.eup %2301  ;;  %2307 = vpow2.f32 %v1550_v30  ;;  %v1136_v35 = vpop.permute.xlu0 %1135  ;;  %v1131_v36 = vsel %vm832_vm3, %v2300_v31, 0.0 }
 0x3ec   : > { %2309 = vpow2.f32 %v1548_v32  ;;  %2097 = vmatprep.subr.mxu0 %v1136_v35  ;;  %2099 = vmatprep.mubr.msk.f32.mxu0 %vm832_vm3, %v2302_v34  ;;  %v1128_v37 = vsel %vm832_vm3, %v2302_v34, 0.0 }
 0x3ed   : > { %1132 = vadd.xlane.f32.xlu1 %v1131_v36  ;;  %1129 = vadd.xlane.f32.xlu0 %v1128_v37 }
 0x3ee   : > { %v2304_v38 = vpop.eup %2303  ;;  %2098 = vmatpush3.msra.mxu0 %v1136_v35  ;;  %v1560_v39 = vpop.permute.xlu1 %1559 }
 0x3ef   : > { %v2306_v40 = vpop.eup %2305  ;;  %2100 = vmatmul.mubr.msk.f32.vlgmr.msra.gmra.mrb[6].mxu0 %vm832_vm3, %v2300_v31  ;;  %2107 = vmatprep.subr.mxu0 %v1348_v33  ;;  %v1343_v41 = vsel %vm832_vm3, %v2304_v38, 0.0  ;;  %v1999_v31 = vld [vmem:[%s3295_s25] ss:$0 sm:$0xff] }
 0x3f0   : > { %2108 = vmatpush3.msra.mxu0 %v1348_v33  ;;  %2109 = vmatprep.mubr.msk.f32.mxu0 %vm832_vm3, %v2306_v40  ;;  %v1340_v42 = vsel %vm832_vm3, %v2306_v40, 0.0 }
 0x3f1   : > { %2117 = vmatprep.subr.mxu0 %v1560_v39  ;;  %1344 = vadd.xlane.f32.xlu0 %v1343_v41 }
 0x3f3   : > { %2110 = vmatmul.mubr.msk.f32.vlgmr.msra.gmra.mrb[8].mxu0 %vm832_vm3, %v2304_v38 }
 0x3f4   : > { %2118 = vmatpush3.msra.mxu0 %v1560_v39 }
 0x3f5   : > { %v2308_v43 = vpop.eup %2307  ;;  %1341 = vadd.xlane.f32.xlu0 %v1340_v42 }
 0x3f6   : > { %v2310_v44 = vpop.eup %2309  ;;  %v1555_v46 = vsel %vm832_vm3, %v2308_v43, 0.0 }
 0x3f7   : > { %2119 = vmatprep.mubr.msk.f32.mxu0 %vm832_vm3, %v2310_v44  ;;  %v1552_v45 = vsel %vm832_vm3, %v2310_v44, 0.0 }
 0x3f8   : > { %1553 = vadd.xlane.f32.xlu1 %v1552_v45  ;;  %2120 = vmatmul.mubr.msk.f32.vlgmr.msra.gmra.mrb[10].mxu0 %vm832_vm3, %v2308_v43 }
 0x3f9   : > { %1556 = vadd.xlane.f32.xlu0 %v1555_v46 }
 0x3fc   : > { %930 = vadd.xlane.f32.xlu1 %v929_v47 }
 0x3fd   : > { %933 = vadd.xlane.f32.xlu0 %v932_v48 }
 0x44d   : > { %v2091_v49 = vpop.f32.mrb[4].mxu0 }
 0x44e   : > { %v1007_v50 = vpop.f32.mrb[5].mxu0 }
 0x47a   : > { %v1130_v51 = vpop.xlane.xlu0 %1129  ;;  %v1133_v53 = vpop.xlane.xlu1 %1132 }
 0x47e   : > { %v1345_v52 = vpop.xlane.xlu0 %1344 }
 0x482   : > { %v1342_v54 = vpop.xlane.xlu0 %1341 }
 0x485   : > { %v1554_v55 = vpop.xlane.xlu1 %1553 }
 0x486   : > { %v1557_v56 = vpop.xlane.xlu0 %1556 }
 0x489   : > { %v931_v57 = vpop.xlane.xlu1 %930 }
 0x48a   : > { %2311 = vrcp.f32 %v931_v57  ;;  %v934_v58 = vpop.xlane.xlu0 %933 }
 0x48b   : > { %2313 = vrcp.f32 %v934_v58 }
 0x48c   : > { %2315 = vrcp.f32 %v1133_v53 }
 0x48d   : > { %2317 = vrcp.f32 %v1130_v51 }
 0x48e   : > { %2319 = vrcp.f32 %v1345_v52 }
 0x48f   : > { %2321 = vrcp.f32 %v1342_v54 }
 0x490   : > { %2323 = vrcp.f32 %v1554_v55 }
 0x491   : > { %2325 = vrcp.f32 %v1557_v56 }
 0x494   : > { %v2312_v59 = vpop.eup %2311 }
 0x495   : > { %v2314_v60 = vpop.eup %2313  ;;  %v1018_v61 = vmul.f32 %v2312_v59, %v1007_v50 }
 0x496   : > { %v1019_v62 = vmul.f32 %v2314_v60, %v2091_v49  ;;  %v2316_v63 = vpop.eup %2315 }
 0x497   : > { %1020 = vst.msk [vmem:[#allocation5] sm:$0xff] %vm832_vm3, %v1018_v61  ;;  %v2318_v1 = vpop.eup %2317 }
 0x498   : > { %1021 = vst.msk [vmem:[#allocation5 + $0x8] sm:$0xff] %vm832_vm3, %v1019_v62  ;;  %v2320_v10 = vpop.eup %2319 }
 0x499   : > { %v2322_v15 = vpop.eup %2321 }
 0x49a   : > { %v2324_v17 = vpop.eup %2323 }
 0x49b   : > { %v2326_v21 = vpop.eup %2325 }
 0x4c2   : > { %v2101_v0 = vpop.f32.mrb[6].mxu0 }
 0x4c3   : > { %v1222_v2 = vmul.f32 %v2316_v63, %v2101_v0  ;;  %v1210_v3 = vpop.f32.mrb[7].mxu0 }
 0x4c4   : > { %v1221_v6 = vmul.f32 %v2318_v1, %v1210_v3 }
 0x4c5   : > { %1227 = vrot.lane.b32.xlu0 %v1222_v2, %s2675_s0 }
 0x4c6   : > { %1225 = vrot.lane.b32.xlu1 %v1221_v6, %s2675_s0  ;;  %v2111_v11 = vpop.f32.mrb[8].mxu0 }
 0x4c7   : > { %v1434_v13 = vmul.f32 %v2320_v10, %v2111_v11  ;;  %v1422_v14 = vpop.f32.mrb[9].mxu0 }
 0x4c8   : > { %v1433_v18 = vmul.f32 %v2322_v15, %v1422_v14 }
 0x4ca   : > { %1439 = vrot.lane.b32.xlu1 %v1434_v13, %s2676_s26 }
 0x4cb   : > { %v2121_v16 = vpop.f32.mrb[10].mxu0 }
 0x4cc   : > { %v1634_v19 = vpop.f32.mrb[11].mxu0  ;;  %v1646_v22 = vmul.f32 %v2326_v21, %v2121_v16 }
 0x4cd   : > { %v1645_v20 = vmul.f32 %v2324_v17, %v1634_v19 }
 0x4ce   : > { %1437 = vrot.lane.b32.xlu1 %v1433_v18, %s2676_s26  ;;  %s2561_s26 = scalar_lea.vmem %s2560_s23, 512 }
 0x4cf   : > { %1649 = vrot.lane.b32.xlu0 %v1645_v20, %s2677_s13  ;;  %p2563_p10 = scmp.lt.s32.totalorder %s2561_s26, %s2555_s4 }
 0x4d1   : > { %p2564_p1 = por %p2563_p10, %p2562_p2 }
 0x4d2   : > { %1651 = vrot.lane.b32.xlu1 %v1646_v22, %s2677_s13 }
 0x4d3   : > { %p2565_p5 = pnand %p2564_p1, %p2558_p12 }
 0x537   : > { %v1228_v23 = vpop.permute.xlu0 %1227 }
 0x538   : > { %1233 = vst.msk [vmem:[#allocation5 + $0x8] sm:$0xff] %vm1231_vm4, %v1228_v23  ;;  %v1226_v24 = vpop.permute.xlu1 %1225 }
 0x539   : > { %1232 = vst.msk [vmem:[#allocation5] sm:$0xff] %vm1231_vm4, %v1226_v24 }
 0x53c   : > { %v1440_v25 = vpop.permute.xlu1 %1439 }
 0x53d   : > { %1445 = vst.msk [vmem:[#allocation5 + $0x8] sm:$0xff] %vm1443_vm5, %v1440_v25 }
 0x540   : > { %v1438_v26 = vpop.permute.xlu1 %1437 }
 0x541   : > { %1444 = vst.msk [vmem:[#allocation5] sm:$0xff] %vm1443_vm5, %v1438_v26  ;;  %v1650_v27 = vpop.permute.xlu0 %1649 }
 0x542   : > { %1656 = vst.msk [vmem:[#allocation5] sm:$0xff] %vm1655_vm6, %v1650_v27 }
 0x544   : > { %v1652_v28 = vpop.permute.xlu1 %1651 }
 0x545   : > { %1657 = vst.msk [vmem:[#allocation5 + $0x8] sm:$0xff] %vm1655_vm6, %v1652_v28 }
 0x549   : > { %v1658_v29 = vld [vmem:[#allocation5] sm:$0xff] }
 0x54a   : > { %2130 = vmatprep.mubr.msk.f32.mxu1 %vm571_vm1, %v1658_v29 }
 0x54c   : > { %v1659_v30 = vld [vmem:[#allocation5 + $0x8] sm:$0xff] }
 0x54d   : > { %2131 = vmatmul.mubr.msk.f32.vlgmr.msra.gmra.mrb[10].mxu1 %vm571_vm1, %v1659_v30 }
 0x620   : > { %v2132_v32 = vpop.f32.mrb[10].mxu1 }
 0x621   : > { %v1749_v33 = vadd.f32 %v2132_v32, %v1999_v31  ;;  %v1743_v34 = vpop.f32.mrb[11].mxu1 }
 0x622   : > { %v1744_v35 = vadd.f32 %v1999_v31, %v1743_v34 }
 0x623   : > { %1753 = vst.msk [vmem:[%s551_s27 + $0x8] sm:$0xff] %vm571_vm1, %v1749_v33 }
 0x624   : > { %1752 = vst.msk [vmem:[%s551_s27] sm:$0xff] %vm571_vm1, %v1744_v35 }
 0x625   : > { %2568 = shalt.err (!%p2565_p5)
}
 0x626   : > { %s2569_s13 = scalar_lea.hbm %s3179_s24, 256  ;;  %s2573_s25 = scalar_lea.hbm %s3297_s6, 512 }
 0x627   : > { %p2570_p8 = scmp.ne.s32.totalorder %s3179_s24, %s2569_s13  ;;  %p2574_p6 = scmp.lt.u32.totalorder %s3179_s24, %s3297_s6 }
 0x628   : > { %p2575_p13 = scmp.lt.u32.totalorder %s2573_s25, %s2569_s13  ;;  %p2577_p9 = scmp.lt.u32.totalorder %s2569_s13, %s3179_s24 }
 0x629   : > { %p2571_p3 = pnand %p2570_p8, %p3298_p0 }
 0x62a   : > { %p2576_p4 = por %p2575_p13, %p2574_p6 }
 0x62b   : > { %p2572_p11 = pneg %p2571_p3 }
 0x62c   : > { %p2578_p7 = por %p2577_p9, %p2576_p4 }
 0x62e   : > { %p2579_p12 = pnand %p2578_p7, %p2572_p11 }
 0x630   : > { %2582 = shalt.err (!%p2579_p12)
}
 0x631   : > { %s2679_s16 = smov 128  }
 0x632   : > { %2183 = dma.vmem_to_hbm [thread:$0]  (%p3298_p0), %s3174_s5, 256, %s3179_s24, %s1755_s3, %s2679_s16, %s2679_s16, %s2675_s0  }
 0x633 PF: > { %s1785_s28 = sand.u32 1, %s2637_s17   ;;  %p3299_p2 = scmp.ne.s32.totalorder %s3277_s2, 0 }
 0x634   : > { %p3300_p10 = scmp.ge.s32.totalorder %s2657_s22, 2  ;;  %s1786_s20 = scalar_lea.sflag [#allocation8], %s1785_s28 }
 0x636   : > { %p2212_p1 = pnand %p3300_p10, %p3299_p2 }
 0x638   : > { %2632 = dma.done.wait (!%p2212_p1), %s1786_s20, 256  }
 0x639   : > { %2634 = vsyncadd (!%p2212_p1), %s1786_s20, 4294967040  ;;  %s33_s22 = sadd.s32 1, %s2657_s22   ;;  %s3301_s17 = smov %s2641_s18 }
 0x63a   : > { %p30_p5 = scmp.ge.s32.totalorder %s33_s22, 4   ;;  %s3302_s18 = smov %s2645_s19 }
 0x63b   : > { %s3303_s19 = smov %s2958_s29  ;;  %s3304_s20 = smov %s2653_s21 }
 0x63c   : > { %s3305_s21 = smov %s3307_s30  ;;  %32 = sbr.rel (!%p30_p5) target bundleno = 22 (0x16), region = 149 }
 0x643   :  { %1791 = vsyncpa [#allocation7], 1 }
 0x644   :  { %1793 = vsyncpa [#allocation7 + $0x1], 1 }
 0x645   :  { %1794 = vsyncpa [#allocation10], 1 }
 0x646   :  { %1796 = vsyncpa [#allocation10 + $0x1], 1 }
 0x647   :  { %1797 = vsyncpa [#allocation13], 1 }
 0x648   :  { %1798 = vsyncpa [#allocation16], 1 }
 0x649   :  { %1799 = vsyncpa [#allocation19], 1 }
 0x64a   :  { %1800 = vsyncpa [#allocation8], 1 }
 0x64b   :  { %1802 = vsyncpa [#allocation8 + $0x1], 1 }

</bundles_post_ra>
